<compile_context>
chip_gen: v7x
topology: tpu7x:2x2x1
jax: 0.10.0
libtpu: 0.0.40
codegen_flags: <defaults>
</compile_context>

<pallas_src>
import jax
import jax.numpy as jnp
from jax.experimental import pallas as pl
from jax.experimental.pallas import tpu as pltpu

# ---------------------------------------------------------------------------
# "cfg" — cvpods CondInst defaults, scaled to small synthetic sizes
# ---------------------------------------------------------------------------
NUM_LAYERS = 3            # MODEL.CONDINST.MASK_HEAD.NUM_LAYERS (kernel hardcodes 3)
CHANNELS = 4              # MODEL.CONDINST.MASK_HEAD.HEAD_CHANNELS
IN_CHANNELS = 4           # MODEL.CONDINST.MASK_BRANCH.OUT_CHANNELS
MASK_OUT_STRIDE = 4       # MODEL.CONDINST.MASK_OUT_STRIDE
DISABLE_REL_COORDS = False
# upper bounds of FCOS.OBJECT_SIZES_OF_INTEREST[:-1] + [last * 2]
_SOI_UPPER = [64.0, 128.0, 256.0, 512.0]
SIZES_OF_INTEREST = jnp.asarray(_SOI_UPPER + [_SOI_UPPER[-1] * 2.0], jnp.float32)

REL_CH = 0 if DISABLE_REL_COORDS else 2
C0 = IN_CHANNELS + REL_CH                         # first-layer input channels

WEIGHT_NUMS = [C0 * CHANNELS, CHANNELS * CHANNELS, CHANNELS * 1]
BIAS_NUMS = [CHANNELS, CHANNELS, 1]
NUM_GEN_PARAMS = sum(WEIGHT_NUMS) + sum(BIAS_NUMS)

assert NUM_LAYERS == 3, "Pallas kernel hardcodes the 3-layer dynamic head"
assert CHANNELS >= 2, "packed-parameter layout needs >= 2 sublane rows"

TI = 8                    # instances processed per grid step (fills 8 sublanes)

# Packed per-instance parameter layout: (n_inst, CHANNELS, PCOLS)
#   sublane axis = output channel (rows 0..1 also reused for shift x/y)
#   lane axis    = parameter column (static slices inside the kernel)
COL_W0 = 0                                    # cols [0, C0)        : w0[:, :, k]
COL_B0 = COL_W0 + C0                          # col  C0             : b0
COL_W1 = COL_B0 + 1                           # cols [.., +CHANNELS): w1[:, :, k]
COL_B1 = COL_W1 + CHANNELS                    # b1
COL_W2 = COL_B1 + 1                           # cols (row 0)        : w2[:, 0, k]
COL_B2 = COL_W2 + CHANNELS                    # b2 (row 0)
COL_SHIFT = COL_B2 + 1                        # rows 0..1 = shift (x, y)
COL_SOI = COL_SHIFT + 1                       # row 0 = 1 / soi
PCOLS = COL_SOI + 1


# ---------------------------------------------------------------------------
# Parameter parsing (mirror of parse_dynamic_params, plain-JAX glue)
# ---------------------------------------------------------------------------
def parse_dynamic_params(params):
    """params: (n, NUM_GEN_PARAMS) -> per-layer dense weights / biases."""
    n = params.shape[0]
    assert params.shape[1] == NUM_GEN_PARAMS
    sizes = WEIGHT_NUMS + BIAS_NUMS
    splits, off = [], 0
    for s in sizes:
        splits.append(params[:, off:off + s])
        off += s
    w0 = splits[0].reshape(n, CHANNELS, C0)
    w1 = splits[1].reshape(n, CHANNELS, CHANNELS)
    w2 = splits[2].reshape(n, 1, CHANNELS)
    b0 = splits[3].reshape(n, CHANNELS, 1)
    b1 = splits[4].reshape(n, CHANNELS, 1)
    b2 = splits[5].reshape(n, 1, 1)
    return (w0, w1, w2), (b0, b1, b2)


# ---------------------------------------------------------------------------
# Pallas kernel: TI instances per grid step, resident feats, fused params,
# compute vectorized over the TI instances.
# ---------------------------------------------------------------------------
def _mask_head_kernel(im_ref, feat_ref, ms_ref, par_ref, out_ref):
    # im_ref  : SMEM (n_pad,) int32           -- scalar-prefetched im_inds
    # feat_ref: VMEM (N, Cin, HW_pad)         -- whole array, resident
    # ms_ref  : VMEM (2, HW_pad)              -- mask_shift^T, shared
    # par_ref : VMEM (TI, CHANNELS, PCOLS)    -- fused per-instance params
    # out_ref : VMEM (TI, HW_pad)
    base = pl.program_id(0) * TI
    p = par_ref[...]                                        # (TI, CH, PCOLS)
    ms = ms_ref[...]                                        # (2, HW_pad)

    # Gather the TI per-instance feature slabs from the resident feats.
    feats = jnp.stack(
        [feat_ref[im_ref[base + t]] for t in range(TI)], axis=0)  # (TI, Cin, HW_pad)

    # ---- layer 0: input = concat([rel_coords, feats]); split contraction ----
    if REL_CH:
        shift = p[:, 0:REL_CH, COL_SHIFT:COL_SHIFT + 1]     # (TI, 2, 1)
        inv_soi = p[:, 0:1, COL_SOI:COL_SOI + 1]            # (TI, 1, 1)
        rel = (shift - ms[None, :, :]) * inv_soi            # (TI, 2, HW_pad)
        y = p[:, :, COL_W0:COL_W0 + 1] * rel[:, 0:1, :]
        for k in range(1, REL_CH):
            y = y + p[:, :, COL_W0 + k:COL_W0 + k + 1] * rel[:, k:k + 1, :]
        for k in range(IN_CHANNELS):
            c = COL_W0 + REL_CH + k
            y = y + p[:, :, c:c + 1] * feats[:, k:k + 1, :]
    else:
        y = p[:, :, COL_W0:COL_W0 + 1] * feats[:, 0:1, :]
        for k in range(1, IN_CHANNELS):
            y = y + p[:, :, COL_W0 + k:COL_W0 + k + 1] * feats[:, k:k + 1, :]
    y = jnp.maximum(y + p[:, :, COL_B0:COL_B0 + 1], 0.0)    # (TI, CH, HW_pad)

    # ---- layer 1 ----
    z = p[:, :, COL_W1:COL_W1 + 1] * y[:, 0:1, :]
    for k in range(1, CHANNELS):
        z = z + p[:, :, COL_W1 + k:COL_W1 + k + 1] * y[:, k:k + 1, :]
    z = jnp.maximum(z + p[:, :, COL_B1:COL_B1 + 1], 0.0)    # (TI, CH, HW_pad)

    # ---- layer 2 (1 output channel, no ReLU) ----
    o = p[:, 0:1, COL_W2:COL_W2 + 1] * z[:, 0:1, :]
    for k in range(1, CHANNELS):
        o = o + p[:, 0:1, COL_W2 + k:COL_W2 + k + 1] * z[:, k:k + 1, :]
    o = o + p[:, 0:1, COL_B2:COL_B2 + 1]                    # (TI, 1, HW_pad)

    # Single lane-dense, full-sublane store for the whole step.
    out_ref[...] = o[:, 0, :]


def mask_heads_forward_pallas(mask_feats, mask_shift, im_inds, shifts, soi, params):
    """Returns mask logits (n_inst, 1, H, W)."""
    N, Cin, H, W = mask_feats.shape
    HW = H * W
    HW_pad = ((HW + 127) // 128) * 128                 # lane-dense stores
    n_inst = im_inds.shape[0]
    n_pad = ((n_inst + TI - 1) // TI) * TI
    pad_n = n_pad - n_inst

    # --- big operands (lane-padded) ---------------------------------------
    feats = mask_feats.reshape(N, Cin, HW).astype(jnp.float32)
    feats = jnp.pad(feats, ((0, 0), (0, 0), (0, HW_pad - HW)))
    # TODO(synk): optional bf16 downcast of feats for v6e/v7x HBM bandwidth;
    # kept f32 here for exact parity with the reference.
    ms_t = jnp.transpose(mask_shift).reshape(2, HW).astype(jnp.float32)
    ms_t = jnp.pad(ms_t, ((0, 0), (0, HW_pad - HW)))

    # --- per-instance operands, padded to n_pad and fused into one array ---
    im = jnp.clip(im_inds.astype(jnp.int32), 0, N - 1)     # guard VMEM OOB
    im = jnp.pad(im, (0, pad_n))
    shifts_p = jnp.pad(shifts.astype(jnp.float32), ((0, pad_n), (0, 0)))
    inv_soi = jnp.pad(1.0 / soi.astype(jnp.float32), (0, pad_n))
    params_p = jnp.pad(params.astype(jnp.float32), ((0, pad_n), (0, 0)))
    (w0, w1, w2), (b0, b1, b2) = parse_dynamic_params(params_p)

    packed = jnp.zeros((n_pad, CHANNELS, PCOLS), jnp.float32)
    packed = packed.at[:, :, COL_W0:COL_W0 + C0].set(w0)
    packed = packed.at[:, :, COL_B0].set(b0[:, :, 0])
    packed = packed.at[:, :, COL_W1:COL_W1 + CHANNELS].set(w1)
    packed = packed.at[:, :, COL_B1].set(b1[:, :, 0])
    packed = packed.at[:, 0, COL_W2:COL_W2 + CHANNELS].set(w2[:, 0, :])
    packed = packed.at[:, 0, COL_B2].set(b2[:, 0, 0])
    if REL_CH:
        packed = packed.at[:, 0:2, COL_SHIFT].set(shifts_p)
        packed = packed.at[:, 0, COL_SOI].set(inv_soi)

    grid_spec = pltpu.PrefetchScalarGridSpec(
        num_scalar_prefetch=1,                 # im_inds -> SMEM, used in-kernel
        grid=(n_pad // TI,),
        in_specs=[
            # whole mask_feats resident in VMEM; constant block index -> one DMA
            pl.BlockSpec((N, Cin, HW_pad), lambda i, im: (0, 0, 0)),
            # shared location shifts (transposed), resident
            pl.BlockSpec((2, HW_pad), lambda i, im: (0, 0)),
            # fused per-instance params, one small DMA per step
            pl.BlockSpec((TI, CHANNELS, PCOLS), lambda i, im: (i, 0, 0)),
        ],
        out_specs=pl.BlockSpec((TI, HW_pad), lambda i, im: (i, 0)),
    )

    out = pl.pallas_call(
        _mask_head_kernel,
        out_shape=jax.ShapeDtypeStruct((n_pad, HW_pad), jnp.float32),
        grid_spec=grid_spec,
        compiler_params=pltpu.CompilerParams(dimension_semantics=("parallel",)),
    )(im, feats, ms_t, packed)

    return out[:n_inst, :HW].reshape(n_inst, 1, H, W)


# ---------------------------------------------------------------------------
# aligned_bilinear (exact semantics of the AdelaiDet / cvpods helper)
# TODO(synk): interpolation kept in plain JAX (gather-based), not in Pallas.
# ---------------------------------------------------------------------------
def aligned_bilinear(x, factor):
    assert x.ndim == 4
    assert factor >= 1 and int(factor) == factor
    if factor == 1:
        return x
    n, c, h, w = x.shape
    x = jnp.pad(x, ((0, 0), (0, 0), (0, 1), (0, 1)), mode="edge")  # replicate right/bottom
    oh = factor * h + 1
    ow = factor * w + 1
    # align_corners=True bilinear from (h+1, w+1) -> (oh, ow): exact 1/factor scale.
    iy = jnp.arange(oh)
    y0 = iy // factor
    fy = (iy % factor).astype(x.dtype) / factor
    x = (x[:, :, y0, :] * (1.0 - fy)[None, None, :, None]
         + x[:, :, jnp.minimum(y0 + 1, h), :] * fy[None, None, :, None])
    ix = jnp.arange(ow)
    x0 = ix // factor
    fx = (ix % factor).astype(x.dtype) / factor
    x = (x[:, :, :, x0] * (1.0 - fx)
         + x[:, :, :, jnp.minimum(x0 + 1, w)] * fx)
    p = factor // 2
    x = jnp.pad(x, ((0, 0), (0, 0), (p, 0), (p, 0)), mode="edge")  # replicate top/left
    return x[:, :, :oh - 1, :ow - 1]


# ---------------------------------------------------------------------------
# Full forward (mirrors DynamicMaskHead.forward)
# ---------------------------------------------------------------------------
def dynamic_mask_head_forward(mask_feats, mask_feat_stride, mask_shift, proposals):
    n_inst = proposals["im_inds"].shape[0]
    if n_inst == 0:
        return proposals
    assert mask_feat_stride >= MASK_OUT_STRIDE
    assert mask_feat_stride % MASK_OUT_STRIDE == 0

    soi = SIZES_OF_INTEREST[proposals["fpn_levels"]]
    mask_logits = mask_heads_forward_pallas(
        mask_feats, mask_shift, proposals["im_inds"], proposals["shifts"],
        soi, proposals["inst_parmas"])
    mask_logits = aligned_bilinear(mask_logits, int(mask_feat_stride // MASK_OUT_STRIDE))

    out = dict(proposals)
    out["pred_global_logits"] = mask_logits
    return out


# ---------------------------------------------------------------------------
# Pure-JAX reference (torch-faithful) for verification
# ---------------------------------------------------------------------------
def _ref_forward(mask_feats, mask_feat_stride, mask_shift, proposals):
    N, Cin, H, W = mask_feats.shape
    HW = H * W
    im_inds = proposals["im_inds"]
    n_inst = im_inds.shape[0]
    rel = proposals["shifts"].reshape(-1, 1, 2) - mask_shift.reshape(1, -1, 2)   # (n, HW, 2)
    rel = jnp.transpose(rel, (0, 2, 1))                                          # (n, 2, HW)
    soi = SIZES_OF_INTEREST[proposals["fpn_levels"]]
    rel = rel / soi.reshape(-1, 1, 1)
    x = jnp.concatenate(
        [rel, mask_feats[im_inds].reshape(n_inst, Cin, HW)], axis=1)             # (n, C0, HW)
    (w0, w1, w2), (b0, b1, b2) = parse_dynamic_params(proposals["inst_parmas"])
    y = jnp.maximum(jnp.einsum("noc,nch->noh", w0, x) + b0, 0.0)
    y = jnp.maximum(jnp.einsum("noc,nch->noh", w1, y) + b1, 0.0)
    y = jnp.einsum("noc,nch->noh", w2, y) + b2
    y = y.reshape(n_inst, 1, H, W)
    return aligned_bilinear(y, int(mask_feat_stride // MASK_OUT_STRIDE))


# ---------------------------------------------------------------------------
if __name__ == "__main__":
    key = jax.random.PRNGKey(0)
    N, H, W = 2, 16, 16
    n_inst = 8
    mask_feat_stride = 8          # -> upsample factor 2

    k1, k2, k3, k4, k5 = jax.random.split(key, 5)
    mask_feats = jax.random.normal(k1, (N, IN_CHANNELS, H, W), jnp.float32)

    # location shifts of the mask-branch grid, (H*W, 2) in (x, y), row-major
    xs = (jnp.arange(W, dtype=jnp.float32) + 0.5) * mask_feat_stride
    ys = (jnp.arange(H, dtype=jnp.float32) + 0.5) * mask_feat_stride
    yy, xx = jnp.meshgrid(ys, xs, indexing="ij")
    mask_shift = jnp.stack([xx.reshape(-1), yy.reshape(-1)], axis=-1)

    proposals = {
        "im_inds": jax.random.randint(k2, (n_inst,), 0, N, jnp.int32),
        "fpn_levels": jax.random.randint(
            k3, (n_inst,), 0, SIZES_OF_INTEREST.shape[0], jnp.int32),
        "shifts": jax.random.uniform(
            k4, (n_inst, 2), jnp.float32, 0.0, float(H * mask_feat_stride)),
        "inst_parmas": 0.1 * jax.random.normal(
            k5, (n_inst, NUM_GEN_PARAMS), jnp.float32),
    }

    out = dynamic_mask_head_forward(mask_feats, mask_feat_stride, mask_shift, proposals)
    logits = jax.block_until_ready(out["pred_global_logits"])

    factor = mask_feat_stride // MASK_OUT_STRIDE
    assert logits.shape == (n_inst, 1, factor * H, factor * W), logits.shape

    ref = jax.block_until_ready(
        _ref_forward(mask_feats, mask_feat_stride, mask_shift, proposals))
    assert jnp.allclose(logits, ref, rtol=1e-4, atol=1e-4), (
        float(jnp.max(jnp.abs(logits - ref))))

    print("KERNEL_OK")
</pallas_src>

<mosaic_0001>
module attributes {stable_mosaic.version = 11 : i64} {
  func.func @_mask_head_kernel(%arg0: i32, %arg1: memref<8xi32, #tpu.memory_space<smem>>, %arg2: memref<2x4x256xf32, #tpu.memory_space<vmem>>, %arg3: memref<2x256xf32, #tpu.memory_space<vmem>>, %arg4: memref<8x4x19xf32, #tpu.memory_space<vmem>>, %arg5: memref<8x256xf32, #tpu.memory_space<vmem>>) attributes {dimension_semantics = [#tpu.dimension_semantics<parallel>], iteration_bounds = array<i64: 1>, scalar_prefetch = 1 : i64, scratch_operands = 0 : i64, tpu.core_type = #tpu.core_type<tc>, window_params = [{pipeline_mode = #tpu.pipeline_mode<synchronous>, transform_indices = @transform_0, window_bounds = array<i64: 2, 4, 256>}, {pipeline_mode = #tpu.pipeline_mode<synchronous>, transform_indices = @transform_1, window_bounds = array<i64: 2, 256>}, {transform_indices = @transform_2, window_bounds = array<i64: 8, 4, 19>}, {transform_indices = @transform_3, window_bounds = array<i64: 8, 256>}]} {
    %c8_i32 = arith.constant 8 : i32
    %0 = arith.muli %arg0, %c8_i32 : i32
    %c0 = arith.constant 0 : index
    %c0_0 = arith.constant 0 : index
    %c0_1 = arith.constant 0 : index
    %1 = vector.load %arg4[%c0, %c0_0, %c0_1] : memref<8x4x19xf32, #tpu.memory_space<vmem>>, vector<8x4x19xf32>
    %c0_2 = arith.constant 0 : index
    %c0_3 = arith.constant 0 : index
    %2 = vector.load %arg3[%c0_2, %c0_3] : memref<2x256xf32, #tpu.memory_space<vmem>>, vector<2x256xf32>
    %c0_i32 = arith.constant 0 : i32
    %3 = arith.addi %0, %c0_i32 : i32
    %4 = arith.index_cast %3 : i32 to index
    %5 = memref.load %arg1[%4] : memref<8xi32, #tpu.memory_space<smem>>
    %6 = arith.index_cast %5 : i32 to index
    %c0_4 = arith.constant 0 : index
    %c0_5 = arith.constant 0 : index
    %7 = vector.load %arg2[%6, %c0_4, %c0_5] : memref<2x4x256xf32, #tpu.memory_space<vmem>>, vector<1x4x256xf32>
    %8 = vector.shape_cast %7 : vector<1x4x256xf32> to vector<4x256xf32>
    %c1_i32 = arith.constant 1 : i32
    %9 = arith.addi %0, %c1_i32 : i32
    %10 = arith.index_cast %9 : i32 to index
    %11 = memref.load %arg1[%10] : memref<8xi32, #tpu.memory_space<smem>>
    %12 = arith.index_cast %11 : i32 to index
    %c0_6 = arith.constant 0 : index
    %c0_7 = arith.constant 0 : index
    %13 = vector.load %arg2[%12, %c0_6, %c0_7] : memref<2x4x256xf32, #tpu.memory_space<vmem>>, vector<1x4x256xf32>
    %14 = vector.shape_cast %13 : vector<1x4x256xf32> to vector<4x256xf32>
    %c2_i32 = arith.constant 2 : i32
    %15 = arith.addi %0, %c2_i32 : i32
    %16 = arith.index_cast %15 : i32 to index
    %17 = memref.load %arg1[%16] : memref<8xi32, #tpu.memory_space<smem>>
    %18 = arith.index_cast %17 : i32 to index
    %c0_8 = arith.constant 0 : index
    %c0_9 = arith.constant 0 : index
    %19 = vector.load %arg2[%18, %c0_8, %c0_9] : memref<2x4x256xf32, #tpu.memory_space<vmem>>, vector<1x4x256xf32>
    %20 = vector.shape_cast %19 : vector<1x4x256xf32> to vector<4x256xf32>
    %c3_i32 = arith.constant 3 : i32
    %21 = arith.addi %0, %c3_i32 : i32
    %22 = arith.index_cast %21 : i32 to index
    %23 = memref.load %arg1[%22] : memref<8xi32, #tpu.memory_space<smem>>
    %24 = arith.index_cast %23 : i32 to index
    %c0_10 = arith.constant 0 : index
    %c0_11 = arith.constant 0 : index
    %25 = vector.load %arg2[%24, %c0_10, %c0_11] : memref<2x4x256xf32, #tpu.memory_space<vmem>>, vector<1x4x256xf32>
    %26 = vector.shape_cast %25 : vector<1x4x256xf32> to vector<4x256xf32>
    %c4_i32 = arith.constant 4 : i32
    %27 = arith.addi %0, %c4_i32 : i32
    %28 = arith.index_cast %27 : i32 to index
    %29 = memref.load %arg1[%28] : memref<8xi32, #tpu.memory_space<smem>>
    %30 = arith.index_cast %29 : i32 to index
    %c0_12 = arith.constant 0 : index
    %c0_13 = arith.constant 0 : index
    %31 = vector.load %arg2[%30, %c0_12, %c0_13] : memref<2x4x256xf32, #tpu.memory_space<vmem>>, vector<1x4x256xf32>
    %32 = vector.shape_cast %31 : vector<1x4x256xf32> to vector<4x256xf32>
    %c5_i32 = arith.constant 5 : i32
    %33 = arith.addi %0, %c5_i32 : i32
    %34 = arith.index_cast %33 : i32 to index
    %35 = memref.load %arg1[%34] : memref<8xi32, #tpu.memory_space<smem>>
    %36 = arith.index_cast %35 : i32 to index
    %c0_14 = arith.constant 0 : index
    %c0_15 = arith.constant 0 : index
    %37 = vector.load %arg2[%36, %c0_14, %c0_15] : memref<2x4x256xf32, #tpu.memory_space<vmem>>, vector<1x4x256xf32>
    %38 = vector.shape_cast %37 : vector<1x4x256xf32> to vector<4x256xf32>
    %c6_i32 = arith.constant 6 : i32
    %39 = arith.addi %0, %c6_i32 : i32
    %40 = arith.index_cast %39 : i32 to index
    %41 = memref.load %arg1[%40] : memref<8xi32, #tpu.memory_space<smem>>
    %42 = arith.index_cast %41 : i32 to index
    %c0_16 = arith.constant 0 : index
    %c0_17 = arith.constant 0 : index
    %43 = vector.load %arg2[%42, %c0_16, %c0_17] : memref<2x4x256xf32, #tpu.memory_space<vmem>>, vector<1x4x256xf32>
    %44 = vector.shape_cast %43 : vector<1x4x256xf32> to vector<4x256xf32>
    %c7_i32 = arith.constant 7 : i32
    %45 = arith.addi %0, %c7_i32 : i32
    %46 = arith.index_cast %45 : i32 to index
    %47 = memref.load %arg1[%46] : memref<8xi32, #tpu.memory_space<smem>>
    %48 = arith.index_cast %47 : i32 to index
    %c0_18 = arith.constant 0 : index
    %c0_19 = arith.constant 0 : index
    %49 = vector.load %arg2[%48, %c0_18, %c0_19] : memref<2x4x256xf32, #tpu.memory_space<vmem>>, vector<1x4x256xf32>
    %50 = vector.shape_cast %49 : vector<1x4x256xf32> to vector<4x256xf32>
    %51 = vector.shape_cast %8 : vector<4x256xf32> to vector<1x4x256xf32>
    %52 = vector.shape_cast %14 : vector<4x256xf32> to vector<1x4x256xf32>
    %53 = vector.shape_cast %20 : vector<4x256xf32> to vector<1x4x256xf32>
    %54 = vector.shape_cast %26 : vector<4x256xf32> to vector<1x4x256xf32>
    %55 = vector.shape_cast %32 : vector<4x256xf32> to vector<1x4x256xf32>
    %56 = vector.shape_cast %38 : vector<4x256xf32> to vector<1x4x256xf32>
    %57 = vector.shape_cast %44 : vector<4x256xf32> to vector<1x4x256xf32>
    %58 = vector.shape_cast %50 : vector<4x256xf32> to vector<1x4x256xf32>
    %59 = tpu.concatenate %51, %52, %53, %54, %55, %56, %57, %58 in 0 : vector<1x4x256xf32>, vector<1x4x256xf32>, vector<1x4x256xf32>, vector<1x4x256xf32>, vector<1x4x256xf32>, vector<1x4x256xf32>, vector<1x4x256xf32>, vector<1x4x256xf32> -> vector<8x4x256xf32>
    %60 = vector.extract_strided_slice %1 {offsets = [0, 0, 17], sizes = [8, 2, 1], strides = [1, 1, 1]} : vector<8x4x19xf32> to vector<8x2x1xf32>
    %61 = vector.extract_strided_slice %1 {offsets = [0, 0, 18], sizes = [8, 1, 1], strides = [1, 1, 1]} : vector<8x4x19xf32> to vector<8x1x1xf32>
    %62 = vector.shape_cast %2 : vector<2x256xf32> to vector<1x2x256xf32>
    %63 = vector.broadcast %60 : vector<8x2x1xf32> to vector<8x2x256xf32>
    %64 = vector.broadcast %62 : vector<1x2x256xf32> to vector<8x2x256xf32>
    %65 = arith.subf %63, %64 : vector<8x2x256xf32>
    %66 = vector.broadcast %61 : vector<8x1x1xf32> to vector<8x2x256xf32>
    %67 = arith.mulf %65, %66 : vector<8x2x256xf32>
    %68 = vector.extract_strided_slice %1 {offsets = [0, 0, 0], sizes = [8, 4, 1], strides = [1, 1, 1]} : vector<8x4x19xf32> to vector<8x4x1xf32>
    %69 = vector.extract_strided_slice %67 {offsets = [0, 0, 0], sizes = [8, 1, 256], strides = [1, 1, 1]} : vector<8x2x256xf32> to vector<8x1x256xf32>
    %70 = vector.broadcast %68 : vector<8x4x1xf32> to vector<8x4x256xf32>
    %71 = vector.broadcast %69 : vector<8x1x256xf32> to vector<8x4x256xf32>
    %72 = arith.mulf %70, %71 : vector<8x4x256xf32>
    %73 = vector.extract_strided_slice %1 {offsets = [0, 0, 1], sizes = [8, 4, 1], strides = [1, 1, 1]} : vector<8x4x19xf32> to vector<8x4x1xf32>
    %74 = vector.extract_strided_slice %67 {offsets = [0, 1, 0], sizes = [8, 1, 256], strides = [1, 1, 1]} : vector<8x2x256xf32> to vector<8x1x256xf32>
    %75 = vector.broadcast %73 : vector<8x4x1xf32> to vector<8x4x256xf32>
    %76 = vector.broadcast %74 : vector<8x1x256xf32> to vector<8x4x256xf32>
    %77 = arith.mulf %75, %76 : vector<8x4x256xf32>
    %78 = arith.addf %72, %77 : vector<8x4x256xf32>
    %79 = vector.extract_strided_slice %1 {offsets = [0, 0, 2], sizes = [8, 4, 1], strides = [1, 1, 1]} : vector<8x4x19xf32> to vector<8x4x1xf32>
    %80 = vector.extract_strided_slice %59 {offsets = [0, 0, 0], sizes = [8, 1, 256], strides = [1, 1, 1]} : vector<8x4x256xf32> to vector<8x1x256xf32>
    %81 = vector.broadcast %79 : vector<8x4x1xf32> to vector<8x4x256xf32>
    %82 = vector.broadcast %80 : vector<8x1x256xf32> to vector<8x4x256xf32>
    %83 = arith.mulf %81, %82 : vector<8x4x256xf32>
    %84 = arith.addf %78, %83 : vector<8x4x256xf32>
    %85 = vector.extract_strided_slice %1 {offsets = [0, 0, 3], sizes = [8, 4, 1], strides = [1, 1, 1]} : vector<8x4x19xf32> to vector<8x4x1xf32>
    %86 = vector.extract_strided_slice %59 {offsets = [0, 1, 0], sizes = [8, 1, 256], strides = [1, 1, 1]} : vector<8x4x256xf32> to vector<8x1x256xf32>
    %87 = vector.broadcast %85 : vector<8x4x1xf32> to vector<8x4x256xf32>
    %88 = vector.broadcast %86 : vector<8x1x256xf32> to vector<8x4x256xf32>
    %89 = arith.mulf %87, %88 : vector<8x4x256xf32>
    %90 = arith.addf %84, %89 : vector<8x4x256xf32>
    %91 = vector.extract_strided_slice %1 {offsets = [0, 0, 4], sizes = [8, 4, 1], strides = [1, 1, 1]} : vector<8x4x19xf32> to vector<8x4x1xf32>
    %92 = vector.extract_strided_slice %59 {offsets = [0, 2, 0], sizes = [8, 1, 256], strides = [1, 1, 1]} : vector<8x4x256xf32> to vector<8x1x256xf32>
    %93 = vector.broadcast %91 : vector<8x4x1xf32> to vector<8x4x256xf32>
    %94 = vector.broadcast %92 : vector<8x1x256xf32> to vector<8x4x256xf32>
    %95 = arith.mulf %93, %94 : vector<8x4x256xf32>
    %96 = arith.addf %90, %95 : vector<8x4x256xf32>
    %97 = vector.extract_strided_slice %1 {offsets = [0, 0, 5], sizes = [8, 4, 1], strides = [1, 1, 1]} : vector<8x4x19xf32> to vector<8x4x1xf32>
    %98 = vector.extract_strided_slice %59 {offsets = [0, 3, 0], sizes = [8, 1, 256], strides = [1, 1, 1]} : vector<8x4x256xf32> to vector<8x1x256xf32>
    %99 = vector.broadcast %97 : vector<8x4x1xf32> to vector<8x4x256xf32>
    %100 = vector.broadcast %98 : vector<8x1x256xf32> to vector<8x4x256xf32>
    %101 = arith.mulf %99, %100 : vector<8x4x256xf32>
    %102 = arith.addf %96, %101 : vector<8x4x256xf32>
    %103 = vector.extract_strided_slice %1 {offsets = [0, 0, 6], sizes = [8, 4, 1], strides = [1, 1, 1]} : vector<8x4x19xf32> to vector<8x4x1xf32>
    %104 = vector.broadcast %103 : vector<8x4x1xf32> to vector<8x4x256xf32>
    %105 = arith.addf %102, %104 : vector<8x4x256xf32>
    %cst = arith.constant 0.000000e+00 : f32
    %106 = vector.broadcast %cst : f32 to vector<8x4x256xf32>
    %107 = arith.maximumf %105, %106 : vector<8x4x256xf32>
    %108 = vector.extract_strided_slice %1 {offsets = [0, 0, 7], sizes = [8, 4, 1], strides = [1, 1, 1]} : vector<8x4x19xf32> to vector<8x4x1xf32>
    %109 = vector.extract_strided_slice %107 {offsets = [0, 0, 0], sizes = [8, 1, 256], strides = [1, 1, 1]} : vector<8x4x256xf32> to vector<8x1x256xf32>
    %110 = vector.broadcast %108 : vector<8x4x1xf32> to vector<8x4x256xf32>
    %111 = vector.broadcast %109 : vector<8x1x256xf32> to vector<8x4x256xf32>
    %112 = arith.mulf %110, %111 : vector<8x4x256xf32>
    %113 = vector.extract_strided_slice %1 {offsets = [0, 0, 8], sizes = [8, 4, 1], strides = [1, 1, 1]} : vector<8x4x19xf32> to vector<8x4x1xf32>
    %114 = vector.extract_strided_slice %107 {offsets = [0, 1, 0], sizes = [8, 1, 256], strides = [1, 1, 1]} : vector<8x4x256xf32> to vector<8x1x256xf32>
    %115 = vector.broadcast %113 : vector<8x4x1xf32> to vector<8x4x256xf32>
    %116 = vector.broadcast %114 : vector<8x1x256xf32> to vector<8x4x256xf32>
    %117 = arith.mulf %115, %116 : vector<8x4x256xf32>
    %118 = arith.addf %112, %117 : vector<8x4x256xf32>
    %119 = vector.extract_strided_slice %1 {offsets = [0, 0, 9], sizes = [8, 4, 1], strides = [1, 1, 1]} : vector<8x4x19xf32> to vector<8x4x1xf32>
    %120 = vector.extract_strided_slice %107 {offsets = [0, 2, 0], sizes = [8, 1, 256], strides = [1, 1, 1]} : vector<8x4x256xf32> to vector<8x1x256xf32>
    %121 = vector.broadcast %119 : vector<8x4x1xf32> to vector<8x4x256xf32>
    %122 = vector.broadcast %120 : vector<8x1x256xf32> to vector<8x4x256xf32>
    %123 = arith.mulf %121, %122 : vector<8x4x256xf32>
    %124 = arith.addf %118, %123 : vector<8x4x256xf32>
    %125 = vector.extract_strided_slice %1 {offsets = [0, 0, 10], sizes = [8, 4, 1], strides = [1, 1, 1]} : vector<8x4x19xf32> to vector<8x4x1xf32>
    %126 = vector.extract_strided_slice %107 {offsets = [0, 3, 0], sizes = [8, 1, 256], strides = [1, 1, 1]} : vector<8x4x256xf32> to vector<8x1x256xf32>
    %127 = vector.broadcast %125 : vector<8x4x1xf32> to vector<8x4x256xf32>
    %128 = vector.broadcast %126 : vector<8x1x256xf32> to vector<8x4x256xf32>
    %129 = arith.mulf %127, %128 : vector<8x4x256xf32>
    %130 = arith.addf %124, %129 : vector<8x4x256xf32>
    %131 = vector.extract_strided_slice %1 {offsets = [0, 0, 11], sizes = [8, 4, 1], strides = [1, 1, 1]} : vector<8x4x19xf32> to vector<8x4x1xf32>
    %132 = vector.broadcast %131 : vector<8x4x1xf32> to vector<8x4x256xf32>
    %133 = arith.addf %130, %132 : vector<8x4x256xf32>
    %cst_20 = arith.constant 0.000000e+00 : f32
    %134 = vector.broadcast %cst_20 : f32 to vector<8x4x256xf32>
    %135 = arith.maximumf %133, %134 : vector<8x4x256xf32>
    %136 = vector.extract_strided_slice %1 {offsets = [0, 0, 12], sizes = [8, 1, 1], strides = [1, 1, 1]} : vector<8x4x19xf32> to vector<8x1x1xf32>
    %137 = vector.extract_strided_slice %135 {offsets = [0, 0, 0], sizes = [8, 1, 256], strides = [1, 1, 1]} : vector<8x4x256xf32> to vector<8x1x256xf32>
    %138 = vector.broadcast %136 : vector<8x1x1xf32> to vector<8x1x256xf32>
    %139 = arith.mulf %138, %137 : vector<8x1x256xf32>
    %140 = vector.extract_strided_slice %1 {offsets = [0, 0, 13], sizes = [8, 1, 1], strides = [1, 1, 1]} : vector<8x4x19xf32> to vector<8x1x1xf32>
    %141 = vector.extract_strided_slice %135 {offsets = [0, 1, 0], sizes = [8, 1, 256], strides = [1, 1, 1]} : vector<8x4x256xf32> to vector<8x1x256xf32>
    %142 = vector.broadcast %140 : vector<8x1x1xf32> to vector<8x1x256xf32>
    %143 = arith.mulf %142, %141 : vector<8x1x256xf32>
    %144 = arith.addf %139, %143 : vector<8x1x256xf32>
    %145 = vector.extract_strided_slice %1 {offsets = [0, 0, 14], sizes = [8, 1, 1], strides = [1, 1, 1]} : vector<8x4x19xf32> to vector<8x1x1xf32>
    %146 = vector.extract_strided_slice %135 {offsets = [0, 2, 0], sizes = [8, 1, 256], strides = [1, 1, 1]} : vector<8x4x256xf32> to vector<8x1x256xf32>
    %147 = vector.broadcast %145 : vector<8x1x1xf32> to vector<8x1x256xf32>
    %148 = arith.mulf %147, %146 : vector<8x1x256xf32>
    %149 = arith.addf %144, %148 : vector<8x1x256xf32>
    %150 = vector.extract_strided_slice %1 {offsets = [0, 0, 15], sizes = [8, 1, 1], strides = [1, 1, 1]} : vector<8x4x19xf32> to vector<8x1x1xf32>
    %151 = vector.extract_strided_slice %135 {offsets = [0, 3, 0], sizes = [8, 1, 256], strides = [1, 1, 1]} : vector<8x4x256xf32> to vector<8x1x256xf32>
    %152 = vector.broadcast %150 : vector<8x1x1xf32> to vector<8x1x256xf32>
    %153 = arith.mulf %152, %151 : vector<8x1x256xf32>
    %154 = arith.addf %149, %153 : vector<8x1x256xf32>
    %155 = vector.extract_strided_slice %1 {offsets = [0, 0, 16], sizes = [8, 1, 1], strides = [1, 1, 1]} : vector<8x4x19xf32> to vector<8x1x1xf32>
    %156 = vector.broadcast %155 : vector<8x1x1xf32> to vector<8x1x256xf32>
    %157 = arith.addf %154, %156 : vector<8x1x256xf32>
    %158 = vector.shape_cast %157 : vector<8x1x256xf32> to vector<8x256xf32>
    %c0_21 = arith.constant 0 : index
    %c0_22 = arith.constant 0 : index
    %159 = vector.load %arg5[%c0_21, %c0_22] : memref<8x256xf32, #tpu.memory_space<vmem>>, vector<8x256xf32>
    tpu.vector_store %arg5[%c0_21, %c0_22], %158 {strides = array<i32>} : memref<8x256xf32, #tpu.memory_space<vmem>>, vector<8x256xf32>,
    return
  }
  func.func @transform_0(%arg0: i32, %arg1: memref<8xi32, #tpu.memory_space<smem>>) -> (i32, i32, i32) {
    %c0_i32 = arith.constant 0 : i32
    %c0_i32_0 = arith.constant 0 : i32
    %c0_i32_1 = arith.constant 0 : i32
    %c0_i32_2 = arith.constant 0 : i32
    return %c0_i32, %c0_i32_0, %c0_i32_1 : i32, i32, i32
  }
  func.func @transform_1(%arg0: i32, %arg1: memref<8xi32, #tpu.memory_space<smem>>) -> (i32, i32) {
    %c0_i32 = arith.constant 0 : i32
    %c0_i32_0 = arith.constant 0 : i32
    %c0_i32_1 = arith.constant 0 : i32
    return %c0_i32, %c0_i32_0 : i32, i32
  }
  func.func @transform_2(%arg0: i32, %arg1: memref<8xi32, #tpu.memory_space<smem>>) -> (i32, i32, i32) {
    %c0_i32 = arith.constant 0 : i32
    %c0_i32_0 = arith.constant 0 : i32
    %c0_i32_1 = arith.constant 0 : i32
    return %arg0, %c0_i32, %c0_i32_0 : i32, i32, i32
  }
  func.func @transform_3(%arg0: i32, %arg1: memref<8xi32, #tpu.memory_space<smem>>) -> (i32, i32) {
    %c0_i32 = arith.constant 0 : i32
    %c0_i32_0 = arith.constant 0 : i32
    return %arg0, %c0_i32 : i32, i32
  }
}

</mosaic_0001>

<bundles_post_ra>
// kernel: tpu_custom_call.1
= control target key start
LH: loop header
LB: loop body
LE: loop exit
PB: predicated region body
PF: predicated region fallthrough
CT: control target
= control target key end

     0   :  { %s4210_s0 = inlined_call_operand.hbm [shape: s32[8], index: 0, kind: input, shape index: {}]   ;;  %s4211_s1 = inlined_call_operand.hbm [shape: f32[2,4,256], index: 1, kind: input, shape index: {}]   ;;  %s4212_s2 = inlined_call_operand.vmem [shape: f32[2,256], index: 2, kind: input, shape index: {}]   ;;  %s4213_s3 = inlined_call_operand.hbm [shape: f32[8,4,19], index: 3, kind: input, shape index: {}]   ;;  %s4214_s4 = inlined_call_operand.hbm [shape: f32[8,256], index: 4, kind: output, shape index: {}]  }
   0x1   :  { %s2542_s17 = scalar_lea.hbm %s4210_s0, 16 }
   0x2   :  { %p2543_p0 = scmp.ne.s32.totalorder %s4210_s0, %s2542_s17  ;;  %p2546_p1 = scmp.lt.u32.totalorder %s2542_s17, %s4210_s0 }
   0x4   :  { %p2548_p2 = pnand %p2546_p1, %p2543_p0 }
   0x6   :  { %2551 = shalt.err (!%p2548_p2)  }
   0x7   :  { %s2626_s22 = smov [#allocation3]  }
   0x8   :  { %10 = dma.hbm_to_smem %s4210_s0, 16, %s2626_s22, [#allocation2] }
   0x9   :  { %2618 = dma.done.wait [#allocation2], 16 }
   0xa   :  { %2619 = vsyncadd [#allocation2], 4294967280 }
   0xb   :  { %12 = sfence }
   0xc   :  { %13 = vsyncpa [#allocation5], 0 }
   0xd   :  { %14 = vsyncpa [#allocation8], 0 }
   0xe   :  { %15 = vsyncpa [#allocation6], 0  ;;  %s2627_s25 = smov [#allocation4]   ;;  %s2552_s29 = scalar_lea.hbm %s4211_s1, 256 }
   0xf   :  { %s21_s26 = sshll.u32 %s2627_s25, 4  ;;  %p2553_p3 = scmp.ne.s32.totalorder %s4211_s1, %s2552_s29  ;;  %s22_s26 = int_to_ptr.vmem [resolvable:$true] %s21_s26 }
  0x10   :  { %p2556_p4 = scmp.lt.u32.totalorder %s2552_s29, %s4211_s1 }
  0x12   :  { %p2558_p5 = pnand %p2556_p4, %p2553_p3 }
  0x14   :  { %2561 = shalt.err (!%p2558_p5)
}
  0x15   :  { %s2562_s0 = scalar_lea.vmem %s22_s26, 256  ;;  %p2567_p7 = scmp.lt.s32.totalorder %s22_s26, %s22_s26 }
  0x16   :  { %p2563_p6 = scmp.ne.s32.totalorder %s22_s26, %s2562_s0  ;;  %p2568_p8 = scmp.lt.s32.totalorder %s2562_s0, %s2562_s0 }
  0x18   :  { %p2569_p9 = por %p2568_p8, %p2567_p7 }
  0x1a   :  { %p2570_p10 = pnand %p2569_p9, %p2563_p6 }
  0x1c   :  { %2573 = shalt.err (!%p2570_p10)
}
  0x1d   :  { %s2628_s8 = smov 128   ;;  %s2629_s9 = smov 8  }
  0x1e   :  { %27 = dma.hbm_to_vmem [thread:$0]  %s4211_s1, 256, %s22_s26, [#allocation5], %s2628_s8, %s2628_s8, %s2629_s9  }
  0x1f   :  { %s2630_s12 = smov [#allocation7]   ;;  %s2574_s16 = scalar_lea.hbm %s4213_s3, 512 }
  0x20   :  { %s35_s13 = sshll.u32 %s2630_s12, 4  ;;  %p2575_p11 = scmp.ne.s32.totalorder %s4213_s3, %s2574_s16  ;;  %s36_s13 = int_to_ptr.vmem [resolvable:$true] %s35_s13 }
  0x21   :  { %p2578_p12 = scmp.lt.u32.totalorder %s2574_s16, %s4213_s3 }
  0x23   :  { %p2580_p13 = pnand %p2578_p12, %p2575_p11 }
  0x25   :  { %2583 = shalt.err (!%p2580_p13)
}
  0x26   :  { %s2584_s21 = scalar_lea.vmem %s36_s13, 512  ;;  %p2589_p1 = scmp.lt.s32.totalorder %s36_s13, %s36_s13 }
  0x27   :  { %p2585_p0 = scmp.ne.s32.totalorder %s36_s13, %s2584_s21  ;;  %p2590_p2 = scmp.lt.s32.totalorder %s2584_s21, %s2584_s21 }
  0x29   :  { %p2591_p3 = por %p2590_p2, %p2589_p1 }
  0x2b   :  { %p2592_p4 = pnand %p2591_p3, %p2585_p0 }
  0x2d   :  { %2595 = shalt.err (!%p2592_p4)
}
  0x2e   :  { %s2631_s1 = smov 64   ;;  %s2632_s22 = smov 4  }
  0x2f   :  { %41 = dma.hbm_to_vmem [thread:$0]  %s4213_s3, 512, %s36_s13, [#allocation8], %s2631_s1, %s2631_s1, %s2632_s22  }
  0x30   :  { %2620 = dma.done.wait [#allocation5], 256  }
  0x31   :  { %2621 = vsyncadd [#allocation5], 4294967040 }
  0x32   :  { %2622 = dma.done.wait [#allocation8], 512  }
  0x33   :  { %2623 = vsyncadd [#allocation8], 4294966784  ;;  %v2633_v0 = vmov 17   ;;  %v2714_v1 = vld [vmem:[#allocation7 + $0x8] sm:$0xf]  ;;  %s2634_s3 = smov 110   ;;  %v260_v38 = vlaneseq }
  0x34   :  { %2495 = vset.pattern.permute.xlu1 %v2633_v0  ;;  %2494 = vset.pattern.permute.xlu0 %v2633_v0  ;;  %v2716_v2 = vld [vmem:[#allocation7] sm:$0xf]  ;;  %v2720_v3 = vld [vmem:[#allocation7 + $0xc] sm:$0xf]  ;;  %v2722_v4 = vld [vmem:[#allocation7 + $0x4] sm:$0xf] }
  0x35   :  { %117 = vperm.xlu1 %2495, %v2714_v1   ;;  %107 = vperm.xlu0 %2494, %v2716_v2   ;;  %v2726_v5 = vld [vmem:[#allocation7 + $0x14] sm:$0xf]  ;;  %v2728_v6 = vld [vmem:[#allocation7 + $0x10] sm:$0xf]  ;;  %v2732_v7 = vld [vmem:[#allocation7 + $0x1c] sm:$0xf] }
  0x36   :  { %v2734_v8 = vld [vmem:[#allocation7 + $0x18] sm:$0xf]  ;;  %v2635_v9 = vmov 0   ;;  %v2636_v10 = vmov 1   ;;  %v2637_v11 = vmov 2   ;;  %v2638_v12 = vmov 3  }
  0x37   :  { %v2639_v13 = vmov 4   ;;  %v2640_v14 = vmov 5   ;;  %v2641_v15 = vmov 6   ;;  %v2642_v22 = vmov 7   ;;  %s2823_s25 = sld [smem:[#allocation3 + $0x1]]  ;;  %s2831_s26 = sld [smem:[#allocation3]] }
  0x38   :  { %v2643_v30 = vmov 8   ;;  %s2833_s27 = sld [smem:[#allocation3 + $0x3]]  ;;  %s2835_s28 = sld [smem:[#allocation3 + $0x5]]  ;;  %v4216_v41 = vmov 9   ;;  %v2858_v42 = vshrl.u32 %v260_v38, 7  ;;  %vm2349_vm0 = vcmask 1041409  }
  0x39   :  { %122 = vperm.xlu1 %2495, %v2720_v3   ;;  %112 = vperm.xlu0 %2494, %v2722_v4   ;;  %s2837_s29 = sld [smem:[#allocation3 + $0x2]]  ;;  %s2844_s30 = sld [smem:[#allocation3 + $0x4]]  ;;  %v2886_v49 = vld.sshfl [vmem:[%s4212_s2] sm:$0x33 pattern:$0x76325410] }
  0x3a   :  { %s2855_s7 = sld [smem:[#allocation3 + $0x7]]  ;;  %s2861_s8 = sld [smem:[#allocation3 + $0x6]]  ;;  %v2873_v45 = vsub.s32 0, %v2858_v42  ;;  %v2876_v46 = vsub.s32 4, %v2858_v42  ;;  %v2916_v61 = vcombine.high %v2886_v49, %v2886_v49  ;;  %vm2352_vm1 = vcmask 1042434  }
  0x3b   :  { %vm2355_vm2 = vcmask 1043459   ;;  %vm2358_vm3 = vcmask 1044484   ;;  %vm2361_vm4 = vcmask 1045509   ;;  %vm2364_vm5 = vcmask 1046534  }
  0x3c   :  { %4262 = vst [vmem:[#allocation18_spill] sm:$0xff] %v2876_v46  ;;  %vm2367_vm6 = vcmask 1047559  }
  0x3d   :  { %132 = vperm.xlu1 %2495, %v2726_v5   ;;  %127 = vperm.xlu0 %2494, %v2728_v6   ;;  %s2444_s5 = sshll.u32 %s2823_s25, 3  ;;  %s2443_s6 = sshll.u32 %s2831_s26, 3 }
  0x3e   :  { %s2446_s0 = sshll.u32 %s2833_s27, 3  ;;  %s2448_s9 = sshll.u32 %s2835_s28, 3 }
  0x3f   :  { %s2445_s10 = sshll.u32 %s2837_s29, 3  ;;  %s2447_s11 = sshll.u32 %s2844_s30, 3 }
  0x40   :  { %s61_s12 = scalar_lea.vmem [#allocation4], %s2443_s6  ;;  %s67_s13 = scalar_lea.vmem [#allocation4], %s2444_s5 }
  0x41   :  { %142 = vperm.xlu1 %2495, %v2732_v7   ;;  %137 = vperm.xlu0 %2494, %v2734_v8   ;;  %v2878_v47 = vld [vmem:[%s61_s12] sm:$0xff]  ;;  %s79_s16 = scalar_lea.vmem [#allocation4], %s2446_s0  ;;  %s91_s17 = scalar_lea.vmem [#allocation4], %s2448_s9 }
  0x42   :  { %v2880_v48 = vld [vmem:[%s67_s13] sm:$0xff]  ;;  %s73_s18 = scalar_lea.vmem [#allocation4], %s2445_s10  ;;  %s2450_s19 = sshll.u32 %s2855_s7, 3  ;;  %v511_v55 = vrot.slane %v2878_v47, %v2873_v45  ;;  %v515_v59 = vrot.slane %v2878_v47, %v2876_v46 }
  0x43   :  { %v2888_v50 = vld [vmem:[%s79_s16] sm:$0xff]  ;;  %v519_v56 = vrot.slane %v2880_v48, %v2873_v45  ;;  %v523_v57 = vrot.slane %v2880_v48, %v2876_v46  ;;  %s85_s2 = scalar_lea.vmem [#allocation4], %s2447_s11  ;;  %s2449_s20 = sshll.u32 %s2861_s8, 3 }
  0x44   :  { %v2894_v53 = vld [vmem:[%s91_s17] sm:$0xff]  ;;  %v535_v60 = vrot.slane %v2888_v50, %v2873_v45  ;;  %v539_v62 = vrot.slane %v2888_v50, %v2876_v46  ;;  %s103_s21 = scalar_lea.vmem [#allocation4], %s2450_s19  ;;  %s97_s1 = scalar_lea.vmem [#allocation4], %s2449_s20 }
  0x45   :  { %174 = vrot.lane.b32.xlu1 %v2722_v4, %s2634_s3  ;;  %172 = vrot.lane.b32.xlu0 %v2716_v2, %s2634_s3  ;;  %4263 = vst [vmem:[#allocation19_spill] sm:$0xff] %v2894_v53  ;;  %v2896_v54 = vld [vmem:[%s73_s18] sm:$0xff]  ;;  %v551_v63 = vrot.slane %v2894_v53, %v2873_v45  ;;  %s2652_s29 = smov [#allocation9]  }
  0x46   :  { %2497 = vset.pattern.permute.xlu1 %v2635_v9  ;;  %2496 = vset.pattern.permute.xlu0 %v2635_v9  ;;  %4264 = vst [vmem:[#allocation20_spill] sm:$0xff] %v2896_v54  ;;  %v2906_v58 = vld [vmem:[%s85_s2] sm:$0xff]  ;;  %v527_v0 = vrot.slane %v2896_v54, %v2873_v45  ;;  %s2393_s30 = sshll.u32 %s2652_s29, 4  ;;  %s2394_s30 = int_to_ptr.vmem [resolvable:$true] %s2393_s30 }
  0x47   :  { %v2968_v38 = vrot.slane %v551_v63, %v2873_v45  ;;  %s2596_s5 = scalar_lea.vmem %s2394_s30, 256  ;;  %p2601_p6 = scmp.lt.s32.totalorder %s2394_s30, %s2394_s30 }
  0x48   :  { %p2597_p5 = scmp.ne.s32.totalorder %s2394_s30, %s2596_s5  ;;  %p2602_p7 = scmp.lt.s32.totalorder %s2596_s5, %s2596_s5 }
  0x49   :  { %178 = vrot.lane.b32.xlu1 %v2720_v3, %s2634_s3  ;;  %176 = vrot.lane.b32.xlu0 %v2714_v1, %s2634_s3  ;;  %4269 = vst [vmem:[#allocation25_spill] sm:$0xff] %v2968_v38 }
  0x4a   :  { %p2603_p8 = por %p2602_p7, %p2601_p6 }
  0x4c   :  { %p2604_p9 = pnand %p2603_p8, %p2597_p5 }
  0x4d   :  { %182 = vrot.lane.b32.xlu1 %v2726_v5, %s2634_s3  ;;  %180 = vrot.lane.b32.xlu0 %v2728_v6, %s2634_s3 }
  0x51   :  { %186 = vrot.lane.b32.xlu1 %v2732_v7, %s2634_s3  ;;  %184 = vrot.lane.b32.xlu0 %v2734_v8, %s2634_s3 }
  0x55   :  { %233 = vperm.xlu1 %2497, %v2722_v4   ;;  %229 = vperm.xlu0 %2496, %v2716_v2  }
  0x59   :  { %237 = vperm.xlu1 %2497, %v2714_v1   ;;  %241 = vperm.xlu0 %2496, %v2720_v3  }
  0x5d   :  { %245 = vperm.xlu1 %2497, %v2728_v6   ;;  %249 = vperm.xlu0 %2496, %v2726_v5  }
  0x61   :  { %253 = vperm.xlu1 %2497, %v2734_v8   ;;  %257 = vperm.xlu0 %2496, %v2732_v7  }
  0x65   :  { %2498 = vset.pattern.permute.xlu1 %v2636_v10  ;;  %2499 = vset.pattern.permute.xlu0 %v2636_v10 }
  0x66   :  { %341 = vperm.xlu1 %2498, %v2716_v2   ;;  %345 = vperm.xlu0 %2499, %v2722_v4  }
  0x6a   :  { %349 = vperm.xlu1 %2498, %v2714_v1   ;;  %357 = vperm.xlu0 %2499, %v2728_v6  }
  0x6e   :  { %353 = vperm.xlu1 %2498, %v2720_v3   ;;  %365 = vperm.xlu0 %2499, %v2734_v8  }
  0x72   :  { %361 = vperm.xlu1 %2498, %v2726_v5   ;;  %2500 = vset.pattern.permute.xlu0 %v2637_v11 }
  0x73   :  { %469 = vperm.xlu0 %2500, %v2716_v2  }
  0x76   :  { %369 = vperm.xlu1 %2498, %v2732_v7  }
  0x77   :  { %481 = vperm.xlu0 %2500, %v2720_v3  }
  0x7a   :  { %2501 = vset.pattern.permute.xlu1 %v2637_v11  ;;  %v555_v11 = vrot.slane %v2894_v53, %v2876_v46 }
  0x7b   :  { %473 = vperm.xlu1 %2501, %v2722_v4   ;;  %489 = vperm.xlu0 %2500, %v2726_v5  }
  0x7f   :  { %477 = vperm.xlu1 %2501, %v2714_v1   ;;  %497 = vperm.xlu0 %2500, %v2732_v7  }
  0x83   :  { %485 = vperm.xlu1 %2501, %v2728_v6   ;;  %2503 = vset.pattern.permute.xlu0 %v2638_v12 }
  0x84   :  { %689 = vperm.xlu0 %2503, %v2722_v4  }
  0x87   :  { %493 = vperm.xlu1 %2501, %v2734_v8  }
  0x88   :  { %701 = vperm.xlu0 %2503, %v2728_v6  }
  0x8b   :  { %2502 = vset.pattern.permute.xlu1 %v2638_v12  ;;  %v543_v12 = vrot.slane %v2906_v58, %v2873_v45 }
  0x8c   :  { %685 = vperm.xlu1 %2502, %v2716_v2   ;;  %709 = vperm.xlu0 %2503, %v2734_v8  }
  0x90   :  { %693 = vperm.xlu1 %2502, %v2714_v1   ;;  %2504 = vset.pattern.permute.xlu0 %v2639_v13 }
  0x91   :  { %893 = vperm.xlu0 %2504, %v2716_v2  }
  0x94   :  { %697 = vperm.xlu1 %2502, %v2720_v3  }
  0x95   :  { %905 = vperm.xlu0 %2504, %v2720_v3  }
  0x98   :  { %705 = vperm.xlu1 %2502, %v2726_v5  }
  0x99   :  { %913 = vperm.xlu0 %2504, %v2726_v5  }
  0x9c   :  { %713 = vperm.xlu1 %2502, %v2732_v7  }
  0x9d   :  { %921 = vperm.xlu0 %2504, %v2732_v7  }
  0xa0   :  { %2505 = vset.pattern.permute.xlu1 %v2639_v13  ;;  %v547_v13 = vrot.slane %v2906_v58, %v2876_v46 }
  0xa1   :  { %897 = vperm.xlu1 %2505, %v2722_v4   ;;  %2507 = vset.pattern.permute.xlu0 %v2640_v14 }
  0xa2   :  { %1105 = vperm.xlu0 %2507, %v2722_v4   ;;  %v2991_v63 = vrot.slane %v547_v13, %v2873_v45 }
  0xa4   :  { %4275 = vst [vmem:[#allocation31_spill] sm:$0xff] %v2991_v63 }
  0xa5   :  { %901 = vperm.xlu1 %2505, %v2714_v1  }
  0xa6   :  { %1117 = vperm.xlu0 %2507, %v2728_v6  }
  0xa9   :  { %909 = vperm.xlu1 %2505, %v2728_v6  }
  0xaa   :  { %1125 = vperm.xlu0 %2507, %v2734_v8  }
  0xad   :  { %917 = vperm.xlu1 %2505, %v2734_v8  }
  0xae   :  { %2508 = vset.pattern.permute.xlu0 %v2641_v15 }
  0xaf   :  { %1309 = vperm.xlu0 %2508, %v2716_v2  }
  0xb1   :  { %2506 = vset.pattern.permute.xlu1 %v2640_v14  ;;  %v2935_v14 = vsub.s32 5, %v2858_v42 }
  0xb2   :  { %1101 = vperm.xlu1 %2506, %v2716_v2  }
  0xb3   :  { %1321 = vperm.xlu0 %2508, %v2720_v3   ;;  %4266 = vst [vmem:[#allocation22_spill] sm:$0xff] %v2935_v14 }
  0xb4   :  { %v2792_v16 = vpop.permute.xlu1 %117  ;;  %v2794_v17 = vpop.permute.xlu0 %107 }
  0xb5   :  { %4258 = vst [vmem:[#allocation14_spill] sm:$0xff] %v2792_v16 }
  0xb6   :  { %1109 = vperm.xlu1 %2506, %v2714_v1  }
  0xb7   :  { %1329 = vperm.xlu0 %2508, %v2726_v5  }
  0xb8   :  { %v2798_v18 = vpop.permute.xlu1 %122  ;;  %v2800_v19 = vpop.permute.xlu0 %112 }
  0xba   :  { %1113 = vperm.xlu1 %2506, %v2720_v3  }
  0xbb   :  { %1337 = vperm.xlu0 %2508, %v2732_v7  }
  0xbc   :  { %v2804_v20 = vpop.permute.xlu1 %132  ;;  %v2806_v21 = vpop.permute.xlu0 %127 }
  0xbe   :  { %1121 = vperm.xlu1 %2506, %v2726_v5  }
  0xbf   :  { %2511 = vset.pattern.permute.xlu0 %v2642_v22 }
  0xc0   :  { %v2809_v23 = vpop.permute.xlu1 %142  ;;  %1377 = vperm.xlu0 %2511, %v2722_v4   ;;  %v2812_v24 = vpop.permute.xlu0 %137 }
  0xc2   :  { %1129 = vperm.xlu1 %2506, %v2732_v7  }
  0xc4   :  { %v175_v25 = vpop.permute.xlu1 %174  ;;  %1389 = vperm.xlu0 %2511, %v2728_v6   ;;  %v173_v26 = vpop.permute.xlu0 %172 }
  0xc5   :  { %2451 = vpush %v173_v26  ;;  %v2945_v26 = vrot.slane %v519_v56, %v2873_v45 }
  0xc6   :  { %2453 = vpush %v175_v25  ;;  %2509 = vset.pattern.permute.xlu1 %v2641_v15  ;;  %v4215_v15 = vmov 10   ;;  %v2942_v25 = vsub.s32 1, %v2858_v42 }
  0xc7   :  { %1313 = vperm.xlu1 %2509, %v2722_v4  }
  0xc8   :  { %v179_v27 = vpop.permute.xlu1 %178  ;;  %1397 = vperm.xlu0 %2511, %v2734_v8   ;;  %v177_v28 = vpop.permute.xlu0 %176  ;;  %v727_v56 = vrot.slane %v2880_v48, %v2942_v25  ;;  %v719_v54 = vrot.slane %v2878_v47, %v2942_v25 }
  0xc9   :  { %2455 = vpush %v177_v28  ;;  %v2952_v28 = vrot.slane %v515_v59, %v2873_v45 }
  0xca   :  { %2457 = vpush %v179_v27  ;;  %v2948_v27 = vrot.slane %v523_v57, %v2873_v45  ;;  %v2977_v57 = vld [vmem:[%s97_s1] sm:$0xff] }
  0xcb   :  { %1317 = vperm.xlu1 %2509, %v2714_v1   ;;  %v563_v13 = vrot.slane %v2977_v57, %v2876_v46  ;;  %v767_v38 = vrot.slane %v2977_v57, %v2942_v25 }
  0xcc   :  { %v183_v29 = vpop.permute.xlu1 %182  ;;  %2512 = vset.pattern.permute.xlu0 %v2643_v30  ;;  %v181_v31 = vpop.permute.xlu0 %180 }
  0xcd   :  { %1485 = vperm.xlu0 %2512, %v2716_v2   ;;  %2459 = vpush %v181_v31 }
  0xce   :  { %2461 = vpush %v183_v29  ;;  %v2955_v29 = vrot.slane %v535_v60, %v2873_v45  ;;  %v2985_v60 = vrot.slane %v555_v11, %v2873_v45  ;;  %v3003_v11 = vsub.s32 6, %v2858_v42 }
  0xcf   :  { %1325 = vperm.xlu1 %2509, %v2728_v6  }
  0xd0   :  { %v187_v32 = vpop.permute.xlu1 %186  ;;  %v185_v33 = vpop.permute.xlu0 %184  ;;  %4273 = vst [vmem:[#allocation29_spill] sm:$0xff] %v2985_v60  ;;  %4277 = vst [vmem:[#allocation33_spill] sm:$0xff] %v3003_v11  ;;  %v723_v60 = vrot.slane %v2878_v47, %v2935_v14 }
  0xd1   :  { %1497 = vperm.xlu0 %2512, %v2720_v3   ;;  %2463 = vpush %v185_v33  ;;  %v2965_v33 = vrot.slane %v539_v62, %v2873_v45  ;;  %v2988_v62 = vrot.slane %v543_v12, %v2873_v45  ;;  %v559_v12 = vrot.slane %v2977_v57, %v2873_v45 }
  0xd2   :  { %2465 = vpush %v187_v32  ;;  %v2961_v32 = vld [vmem:[%s103_s21] sm:$0xff] }
  0xd3   :  { %1333 = vperm.xlu1 %2509, %v2734_v8   ;;  %4267 = vst [vmem:[#allocation23_spill] sm:$0xff] %v2961_v32  ;;  %4268 = vst [vmem:[#allocation24_spill] sm:$0xff] %v2965_v33  ;;  %v567_v31 = vrot.slane %v2961_v32, %v2873_v45 }
  0xd4   :  { %v2826_v34 = vpop.permute.xlu1 %233  ;;  %v2828_v35 = vpop.permute.xlu0 %229  ;;  %4274 = vst [vmem:[#allocation30_spill] sm:$0xff] %v2988_v62 }
  0xd5   :  { %1505 = vperm.xlu0 %2512, %v2726_v5   ;;  %v3038_v62 = vrot.slane %v567_v31, %v2873_v45 }
  0xd7   :  { %2510 = vset.pattern.permute.xlu1 %v2642_v22  ;;  %v2939_v22 = vrot.slane %v511_v55, %v2873_v45  ;;  %v2971_v55 = vrot.slane %v527_v0, %v2873_v45  ;;  %v731_v0 = vrot.slane %v2880_v48, %v2935_v14  ;;  %4281 = vst [vmem:[#allocation37_spill] sm:$0xff] %v3038_v62 }
  0xd8   :  { %v2839_v36 = vpop.permute.xlu1 %237  ;;  %1373 = vperm.xlu1 %2510, %v2716_v2   ;;  %v2842_v37 = vpop.permute.xlu0 %241  ;;  %v3067_v62 = vrot.slane %v767_v38, %v2942_v25 }
  0xd9   :  { %4259 = vst [vmem:[#allocation15_spill] sm:$0xff] %v2839_v36  ;;  %1513 = vperm.xlu0 %2512, %v2732_v7   ;;  %4270 = vst [vmem:[#allocation26_spill] sm:$0xff] %v2971_v55  ;;  %v751_v55 = vrot.slane %v2906_v58, %v2942_v25  ;;  %v3015_v36 = vrot.slane %v727_v56, %v2942_v25  ;;  %v3027_v33 = vrot.slane %v731_v0, %v2942_v25 }
  0xda   :  { %v771_v56 = vrot.slane %v2977_v57, %v2935_v14  ;;  %4289 = vst [vmem:[#allocation45_spill] sm:$0xff] %v3067_v62 }
  0xdb   :  { %4278 = vst [vmem:[#allocation34_spill] sm:$0xff] %v3015_v36  ;;  %4280 = vst [vmem:[#allocation36_spill] sm:$0xff] %v3027_v33  ;;  %v3052_v33 = vrot.slane %v563_v13, %v2873_v45  ;;  %v3055_v31 = vrot.slane %v751_v55, %v2942_v25  ;;  %v3061_v36 = vrot.slane %v719_v54, %v2942_v25 }
  0xdc   :  { %v2848_v39 = vpop.permute.xlu1 %245  ;;  %1381 = vperm.xlu1 %2510, %v2714_v1   ;;  %v2851_v40 = vpop.permute.xlu0 %249  ;;  %v3073_v13 = vrot.slane %v771_v56, %v2942_v25  ;;  %v955_v56 = vrot.slane %v2888_v50, %v3003_v11 }
  0xdd   :  { %4260 = vst [vmem:[#allocation16_spill] sm:$0xff] %v2851_v40  ;;  %2515 = vset.pattern.permute.xlu0 %v4216_v41  ;;  %v3000_v41 = vsub.s32 2, %v2858_v42  ;;  %v743_v40 = vrot.slane %v2888_v50, %v2942_v25  ;;  %4284 = vst [vmem:[#allocation40_spill] sm:$0xff] %v3052_v33 }
  0xde   :  { %1617 = vperm.xlu0 %2515, %v2722_v4   ;;  %4285 = vst [vmem:[#allocation41_spill] sm:$0xff] %v3055_v31  ;;  %4287 = vst [vmem:[#allocation43_spill] sm:$0xff] %v3061_v36  ;;  %v987_v36 = vrot.slane %v2961_v32, %v3003_v11  ;;  %v3122_v31 = vsub.s32 7, %v2858_v42 }
  0xdf   :  { %4276 = vst [vmem:[#allocation32_spill] sm:$0xff] %v3000_v41  ;;  %v927_v0 = vrot.slane %v2878_v47, %v3000_v41  ;;  %4291 = vst [vmem:[#allocation47_spill] sm:$0xff] %v3073_v13  ;;  %v3076_v55 = vrot.slane %v743_v40, %v2942_v25  ;;  %v951_v54 = vrot.slane %v2888_v50, %v3000_v41 }
  0xe0   :  { %v2865_v43 = vpop.permute.xlu1 %253  ;;  %1385 = vperm.xlu1 %2510, %v2720_v3   ;;  %v2868_v44 = vpop.permute.xlu0 %257  ;;  %v759_v40 = vrot.slane %v2894_v53, %v2942_v25  ;;  %v935_v62 = vrot.slane %v2880_v48, %v3000_v41  ;;  %4298 = vst [vmem:[#allocation54_spill] sm:$0xff] %v3122_v31 }
  0xe1   :  { %4261 = vst [vmem:[#allocation17_spill] sm:$0xff] %v2865_v43  ;;  %v3049_v43 = vrot.slane %v559_v12, %v2873_v45  ;;  %4292 = vst [vmem:[#allocation48_spill] sm:$0xff] %v3076_v55  ;;  %v3086_v38 = vrot.slane %v927_v0, %v3000_v41  ;;  %v971_v0 = vrot.slane %v2894_v53, %v3003_v11 }
  0xe2   :  { %1629 = vperm.xlu0 %2515, %v2728_v6   ;;  %v775_v55 = vrot.slane %v2961_v32, %v2942_v25  ;;  %v3115_v13 = vrot.slane %v951_v54, %v3000_v41  ;;  %v959_v54 = vrot.slane %v2906_v58, %v3000_v41 }
  0xe3   :  { %4283 = vst [vmem:[#allocation39_spill] sm:$0xff] %v3049_v43  ;;  %4294 = vst [vmem:[#allocation50_spill] sm:$0xff] %v3086_v38  ;;  %v983_v38 = vrot.slane %v2961_v32, %v3000_v41  ;;  %v3132_v43 = vrot.slane %v759_v40, %v2942_v25 }
  0xe4   :  { %1393 = vperm.xlu1 %2510, %v2726_v5   ;;  %4297 = vst [vmem:[#allocation53_spill] sm:$0xff] %v3115_v13  ;;  %v4231_v13 = vmov 11  }
  0xe5   :  { %v2890_v51 = vpop.permute.xlu1 %341  ;;  %v2892_v52 = vpop.permute.xlu0 %345  ;;  %4301 = vst [vmem:[#allocation57_spill] sm:$0xff] %v3132_v43  ;;  %v3152_v43 = vrot.slane %v775_v55, %v2942_v25 }
  0xe6   :  { %1637 = vperm.xlu0 %2515, %v2734_v8  }
  0xe7   :  { %4305 = vst [vmem:[#allocation61_spill] sm:$0xff] %v3152_v43 }
  0xe8   :  { %1401 = vperm.xlu1 %2510, %v2732_v7  }
  0xe9   :  { %v2924_v9 = vpop.permute.xlu1 %349  ;;  %v2926_v10 = vpop.permute.xlu0 %357 }
  0xea   :  { %4265 = vst [vmem:[#allocation21_spill] sm:$0xff] %v2924_v9  ;;  %2516 = vset.pattern.permute.xlu0 %v4215_v15  ;;  %v571_v15 = vrot.slane %v2961_v32, %v2876_v46  ;;  %v755_v9 = vrot.slane %v2906_v58, %v2935_v14 }
  0xeb   :  { %1741 = vperm.xlu0 %2516, %v2716_v2  }
  0xec   :  { %2513 = vset.pattern.permute.xlu1 %v2643_v30 }
  0xed   :  { %1489 = vperm.xlu1 %2513, %v2722_v4   ;;  %v2980_v59 = vpop.permute.xlu1 %353  ;;  %v2982_v30 = vpop.permute.xlu0 %365 }
  0xee   :  { %4271 = vst [vmem:[#allocation27_spill] sm:$0xff] %v2980_v59  ;;  %4272 = vst [vmem:[#allocation28_spill] sm:$0xff] %v2982_v30  ;;  %v747_v59 = vrot.slane %v2888_v50, %v2935_v14  ;;  %v3041_v30 = vrot.slane %v571_v15, %v2873_v45  ;;  %v3058_v15 = vrot.slane %v755_v9, %v2942_v25 }
  0xef   :  { %1753 = vperm.xlu0 %2516, %v2720_v3  }
  0xf0   :  { %4282 = vst [vmem:[#allocation38_spill] sm:$0xff] %v3041_v30  ;;  %4286 = vst [vmem:[#allocation42_spill] sm:$0xff] %v3058_v15  ;;  %v3064_v30 = vrot.slane %v723_v60, %v2942_v25  ;;  %v3079_v9 = vrot.slane %v747_v59, %v2942_v25  ;;  %v763_v59 = vrot.slane %v2894_v53, %v2935_v14 }
  0xf1   :  { %1493 = vperm.xlu1 %2513, %v2714_v1   ;;  %v3024_v46 = vpop.permute.xlu1 %361  ;;  %v939_v15 = vrot.slane %v2880_v48, %v3003_v11 }
  0xf2   :  { %4279 = vst [vmem:[#allocation35_spill] sm:$0xff] %v3024_v46  ;;  %v3035_v63 = vpop.permute.xlu0 %469  ;;  %v931_v46 = vrot.slane %v2878_v47, %v3003_v11  ;;  %4288 = vst [vmem:[#allocation44_spill] sm:$0xff] %v3064_v30 }
  0xf3   :  { %1761 = vperm.xlu0 %2516, %v2726_v5   ;;  %4293 = vst [vmem:[#allocation49_spill] sm:$0xff] %v3079_v9  ;;  %v967_v9 = vrot.slane %v2894_v53, %v3000_v41  ;;  %v3170_v55 = vrot.slane %v939_v15, %v3000_v41  ;;  %v1171_v15 = vrot.slane %v2906_v58, %v3122_v31  ;;  %v4337_v53 = vld [vmem:[#allocation30_spill] sm:$0xff] }
  0xf4   :  { %v3089_v30 = vrot.slane %v931_v46, %v3000_v41  ;;  %v3103_v46 = vsub.s32 3, %v2858_v42  ;;  %v3140_v42 = vrot.slane %v763_v59, %v2942_v25  ;;  %v3158_v59 = vrot.slane %v983_v38, %v3000_v41 }
  0xf5   :  { %1501 = vperm.xlu1 %2513, %v2728_v6   ;;  %v3070_v12 = vpop.permute.xlu1 %369  ;;  %4311 = vst [vmem:[#allocation66_spill] sm:$0xff] %v3170_v55 }
  0xf6   :  { %4290 = vst [vmem:[#allocation46_spill] sm:$0xff] %v3070_v12  ;;  %v3083_v60 = vpop.permute.xlu0 %481  ;;  %4295 = vst [vmem:[#allocation51_spill] sm:$0xff] %v3089_v30  ;;  %v779_v30 = vrot.slane %v2961_v32, %v2935_v14  ;;  %v3129_v32 = vrot.slane %v955_v56, %v3000_v41  ;;  %s3136_s22 = spop %2451  ;;  %v3143_v12 = vrot.slane %v967_v9, %v3000_v41 }
  0xf7   :  { %1769 = vperm.xlu0 %2516, %v2732_v7   ;;  %4296 = vst [vmem:[#allocation52_spill] sm:$0xff] %v3103_v46  ;;  %4302 = vst [vmem:[#allocation58_spill] sm:$0xff] %v3140_v42  ;;  %v3146_v56 = vrot.slane %v971_v0, %v3000_v41  ;;  %v1143_v40 = vrot.slane %v2880_v48, %v3103_v46  ;;  %v3161_v9 = vrot.slane %v987_v36, %v3000_v41  ;;  %s3163_s23 = spop %2453  ;;  %v4309_v0 = vmov 9  }
  0xf8   :  { %4300 = vst [vmem:[#allocation56_spill] sm:$0xff] %v3129_v32  ;;  %4303 = vst [vmem:[#allocation59_spill] sm:$0xff] %v3143_v12  ;;  %v3155_v32 = vrot.slane %v779_v30, %v2942_v25  ;;  %v1147_v30 = vrot.slane %v2880_v48, %v3122_v31  ;;  %v158_v48 = vsub.f32 %v2800_v19, %v2886_v49 }
  0xf9   :  { %1509 = vperm.xlu1 %2513, %v2734_v8   ;;  %4304 = vst [vmem:[#allocation60_spill] sm:$0xff] %v3146_v56  ;;  %4307 = vst [vmem:[#allocation63_spill] sm:$0xff] %v3158_v59  ;;  %v3182_v56 = vrot.slane %v959_v54, %v3000_v41  ;;  %v3191_v12 = vrot.slane %v1143_v40, %v3103_v46  ;;  %v979_v42 = vrot.slane %v2977_v57, %v3003_v11 }
  0xfa   :  { %v3124_v14 = vpop.permute.xlu1 %473  ;;  %v3126_v33 = vpop.permute.xlu0 %489  ;;  %4306 = vst [vmem:[#allocation62_spill] sm:$0xff] %v3155_v32  ;;  %4308 = vst [vmem:[#allocation64_spill] sm:$0xff] %v3161_v9  ;;  %v156_v54 = vsub.f32 %v2794_v17, %v2886_v49  ;;  %v189_v40 = vstv %s3136_s22  ;;  %v1135_v55 = vrot.slane %v2878_v47, %v3103_v46  ;;  %v3218_v59 = vrot.slane %v1147_v30, %v3103_v46  ;;  %s3236_s24 = spop %2455 }
  0xfb   :  { %4299 = vst [vmem:[#allocation55_spill] sm:$0xff] %v3126_v33  ;;  %2519 = vset.pattern.permute.xlu0 %v4231_v13  ;;  %v3167_v13 = vrot.slane %v935_v62, %v3000_v41  ;;  %4313 = vst [vmem:[#allocation68_spill] sm:$0xff] %v3182_v56  ;;  %v1167_v62 = vrot.slane %v2906_v58, %v3103_v46  ;;  %v192_v33 = vstv %s3163_s23  ;;  %s3262_s3 = spop %2457 }
  0xfc   :  { %1873 = vperm.xlu0 %2519, %v2722_v4   ;;  %4314 = vst [vmem:[#allocation69_spill] sm:$0xff] %v3191_v12  ;;  %v1187_v56 = vrot.slane %v2977_v57, %v3122_v31  ;;  %v159_v12 = vsub.f32 %v2800_v19, %v2916_v61  ;;  %v214_v32 = vmul.f32 %v192_v33, %v158_v48 }
  0xfd   :  { %2514 = vset.pattern.permute.xlu1 %v4309_v0  ;;  %4310 = vst [vmem:[#allocation65_spill] sm:$0xff] %v3167_v13  ;;  %v963_v0 = vrot.slane %v2906_v58, %v3003_v11  ;;  %v1183_v58 = vrot.slane %v2977_v57, %v3103_v46  ;;  %v1139_v11 = vrot.slane %v2878_v47, %v3122_v31 }
  0xfe   :  { %1613 = vperm.xlu1 %2514, %v2716_v2   ;;  %v3175_v38 = vpop.permute.xlu1 %477  ;;  %v3177_v36 = vpop.permute.xlu0 %497  ;;  %v157_v13 = vsub.f32 %v2794_v17, %v2916_v61  ;;  %v3224_v19 = vrot.slane %v1167_v62, %v3103_v46  ;;  %v3229_v47 = vrot.slane %v1171_v15, %v3103_v46  ;;  %v212_v30 = vmul.f32 %v189_v40, %v156_v54  ;;  %s3271_s25 = spop %2459 }
  0xff   :  { %4312 = vst [vmem:[#allocation67_spill] sm:$0xff] %v3175_v38  ;;  %v975_v38 = vrot.slane %v2977_v57, %v3000_v41  ;;  %v3221_v57 = vrot.slane %v963_v0, %v3000_v41  ;;  %v3240_v0 = vrot.slane %v979_v42, %v3000_v41  ;;  %v3243_v62 = vrot.slane %v1183_v58, %v3103_v46  ;;  %s3292_s26 = spop %2461 }
 0x100   :  { %1885 = vperm.xlu0 %2519, %v2728_v6   ;;  %4316 = vst [vmem:[#allocation71_spill] sm:$0xff] %v3229_v47  ;;  %v1163_v15 = vrot.slane %v2888_v50, %v3122_v31  ;;  %v215_v48 = vmul.f32 %v192_v33, %v159_v12  ;;  %v3254_v54 = vrot.slane %v1139_v11, %v3103_v46 }
 0x101   :  { %v3232_v17 = vrot.slane %v975_v38, %v3000_v41  ;;  %4318 = vst [vmem:[#allocation73_spill] sm:$0xff] %v3240_v0  ;;  %v3248_v38 = vrot.slane %v1187_v56, %v3103_v46  ;;  %v213_v47 = vmul.f32 %v189_v40, %v157_v13  ;;  %v271_v12 = vrot.slane %v214_v32, %v2873_v45 }
 0x102   :  { %1621 = vperm.xlu1 %2514, %v2714_v1   ;;  %v3215_v9 = vpop.permute.xlu1 %485  ;;  %4321 = vst [vmem:[#allocation76_spill] sm:$0xff] %v3254_v54  ;;  %v383_v11 = vrot.slane %v214_v32, %v2942_v25  ;;  %v163_v13 = vsub.f32 %v2798_v18, %v2916_v61  ;;  %v263_v40 = vrot.slane %v212_v30, %v2873_v45  ;;  %v4240_v41 = vmov 12   ;;  %s3299_s27 = spop %2463 }
 0x103   :  { %4315 = vst [vmem:[#allocation70_spill] sm:$0xff] %v3215_v9  ;;  %v3226_v43 = vpop.permute.xlu0 %689  ;;  %4317 = vst [vmem:[#allocation72_spill] sm:$0xff] %v3232_v17  ;;  %v1159_v9 = vrot.slane %v2888_v50, %v3103_v46  ;;  %v3251_v17 = vrot.slane %v1135_v55, %v3103_v46  ;;  %v162_v50 = vsub.f32 %v2798_v18, %v2886_v49  ;;  %v198_v54 = vstv %s3262_s3  ;;  %s2466_s28 = spop %2465 }
 0x104   :  { %1893 = vperm.xlu0 %2519, %v2734_v8   ;;  %4319 = vst [vmem:[#allocation74_spill] sm:$0xff] %v3248_v38  ;;  %v164_v58 = vsub.f32 %v2806_v21, %v2886_v49  ;;  %v165_v42 = vsub.f32 %v2806_v21, %v2916_v61  ;;  %v3285_v18 = vrot.slane %v1163_v15, %v3103_v46 }
 0x105   :  { %4320 = vst [vmem:[#allocation75_spill] sm:$0xff] %v3251_v17  ;;  %v3276_v55 = vrot.slane %v1159_v9, %v3103_v46  ;;  %v375_v32 = vrot.slane %v212_v30, %v2942_v25  ;;  %v275_v16 = vrot.slane %v215_v48, %v2873_v45  ;;  %v387_v9 = vrot.slane %v215_v48, %v2942_v25 }
 0x106   :  { %1625 = vperm.xlu1 %2514, %v2720_v3   ;;  %v3265_v33 = vpop.permute.xlu1 %493  ;;  %4323 = vst [vmem:[#allocation78_spill] sm:$0xff] %v3285_v18  ;;  %v267_v21 = vrot.slane %v213_v47, %v2873_v45  ;;  %v326_v30 = vmul.f32 %v271_v12, %v2826_v34  ;;  %v438_v48 = vmul.f32 %v383_v11, %v2892_v52 }
 0x107   :  { %v3273_v56 = vpop.permute.xlu0 %701  ;;  %4322 = vst [vmem:[#allocation77_spill] sm:$0xff] %v3276_v55  ;;  %v324_v15 = vmul.f32 %v263_v40, %v2828_v35  ;;  %v168_v17 = vsub.f32 %v2812_v24, %v2886_v49  ;;  %v169_v12 = vsub.f32 %v2812_v24, %v2916_v61  ;;  %v436_v11 = vmul.f32 %v375_v32, %v2890_v51 }
 0x108   :  { %2520 = vset.pattern.permute.xlu0 %v4240_v41  ;;  %v379_v41 = vrot.slane %v213_v47, %v2942_v25  ;;  %v327_v0 = vmul.f32 %v275_v16, %v2826_v34  ;;  %v439_v38 = vmul.f32 %v387_v9, %v2892_v52  ;;  %v325_v47 = vmul.f32 %v267_v21, %v2828_v35 }
 0x109   :  { %1933 = vperm.xlu0 %2520, %v2716_v2   ;;  %v201_v2 = vstv %s3271_s25  ;;  %v170_v31 = vsub.f32 %v2809_v23, %v2886_v49  ;;  %v171_v24 = vsub.f32 %v2809_v23, %v2916_v61  ;;  %v454_v32 = vadd.f32 %v438_v48, %v326_v30 }
 0x10a   :  { %1633 = vperm.xlu1 %2514, %v2726_v5   ;;  %v437_v40 = vmul.f32 %v379_v41, %v2890_v51  ;;  %v3330_v16 = vmul.f32 %v198_v54, %v162_v50  ;;  %v3332_v34 = vmul.f32 %v198_v54, %v163_v13  ;;  %v210_v52 = vstv %s2466_s28 }
 0x10b   :  { %v3304_v55 = vpop.permute.xlu1 %685  ;;  %v3306_v18 = vpop.permute.xlu0 %709  ;;  %v3338_v35 = vmul.f32 %v2939_v22, %v3035_v63  ;;  %v3342_v41 = vmul.f32 %v2952_v28, %v3035_v63  ;;  %v220_v23 = vmul.f32 %v201_v2, %v164_v58  ;;  %v221_v51 = vmul.f32 %v201_v2, %v165_v42 }
 0x10c   :  { %v3346_v21 = vadd.f32 %v436_v11, %v324_v15  ;;  %v3350_v54 = vmul.f32 %v2955_v29, %v3083_v60  ;;  %v455_v50 = vadd.f32 %v439_v38, %v327_v0  ;;  %v654_v13 = vmul.f32 %v2945_v26, %v3124_v14 }
 0x10d   :  { %1945 = vperm.xlu0 %2520, %v2720_v3   ;;  %v3355_v22 = vadd.f32 %v437_v40, %v325_v47  ;;  %v207_v28 = vstv %s3299_s27  ;;  %v226_v63 = vmul.f32 %v210_v52, %v170_v31  ;;  %v227_v58 = vmul.f32 %v210_v52, %v171_v24 }
 0x10e   :  { %1641 = vperm.xlu1 %2514, %v2732_v7   ;;  %v4325_v42 = vmov 10   ;;  %v655_v15 = vmul.f32 %v2948_v27, %v3124_v14  ;;  %v3361_v30 = vadd.f32 %v654_v13, %v454_v32  ;;  %v287_v29 = vrot.slane %v3330_v16, %v2873_v45 }
 0x10f   :  { %v3334_v3 = vpop.permute.xlu1 %693  ;;  %v291_v26 = vrot.slane %v3332_v34, %v2873_v45  ;;  %v295_v31 = vrot.slane %v220_v23, %v2873_v45  ;;  %v299_v0 = vrot.slane %v221_v51, %v2873_v45  ;;  %v407_v38 = vrot.slane %v220_v23, %v2942_v25 }
 0x110   :  { %4324 = vst [vmem:[#allocation79_spill] sm:$0xff] %v3334_v3  ;;  %v3344_v9 = vpop.permute.xlu0 %893  ;;  %v411_v14 = vrot.slane %v221_v51, %v2942_v25  ;;  %v671_v48 = vadd.f32 %v655_v15, %v455_v50  ;;  %v399_v2 = vrot.slane %v3330_v16, %v2942_v25  ;;  %v224_v47 = vmul.f32 %v207_v28, %v168_v17 }
 0x111   :  { %1953 = vperm.xlu0 %2520, %v2726_v5   ;;  %v225_v11 = vmul.f32 %v207_v28, %v169_v12  ;;  %v319_v40 = vrot.slane %v226_v63, %v2873_v45  ;;  %v323_v24 = vrot.slane %v227_v58, %v2873_v45  ;;  %v431_v32 = vrot.slane %v226_v63, %v2942_v25 }
 0x112   :  { %2517 = vset.pattern.permute.xlu1 %v4325_v42  ;;  %v435_v52 = vrot.slane %v227_v58, %v2942_v25  ;;  %v3384_v23 = vmul.f32 %v287_v29, %v2842_v37  ;;  %v3387_v51 = vmul.f32 %v291_v26, %v2842_v37  ;;  %v403_v17 = vrot.slane %v3332_v34, %v2942_v25  ;;  %v4327_v29 = vld [vmem:[#allocation46_spill] sm:$0xff] }
 0x113   :  { %1745 = vperm.xlu1 %2517, %v2722_v4   ;;  %v3368_v5 = vpop.permute.xlu1 %697  ;;  %v204_v12 = vstv %s3292_s26  ;;  %v332_v16 = vmul.f32 %v295_v31, %v2848_v39  ;;  %v333_v50 = vmul.f32 %v299_v0, %v2848_v39  ;;  %v444_v13 = vmul.f32 %v407_v38, %v2926_v10 }
 0x114   :  { %v3374_v27 = vpop.permute.xlu0 %905  ;;  %v445_v28 = vmul.f32 %v411_v14, %v2926_v10  ;;  %v311_v37 = vrot.slane %v224_v47, %v2873_v45  ;;  %v315_v58 = vrot.slane %v225_v11, %v2873_v45  ;;  %v423_v34 = vrot.slane %v224_v47, %v2942_v25  ;;  %v4330_v47 = vld [vmem:[#allocation37_spill] sm:$0xff] }
 0x115   :  { %1961 = vperm.xlu0 %2520, %v2732_v7   ;;  %v4243_v42 = vmov 13   ;;  %v338_v15 = vmul.f32 %v319_v40, %v2868_v44  ;;  %v339_v39 = vmul.f32 %v323_v24, %v2868_v44  ;;  %v450_v26 = vmul.f32 %v431_v32, %v4327_v29  ;;  %v4331_v44 = vld [vmem:[#allocation38_spill] sm:$0xff] }
 0x116   :  { %v451_v10 = vmul.f32 %v435_v52, %v4327_v29  ;;  %v4328_v31 = vsub.f32 %v2804_v20, %v2886_v49  ;;  %v4329_v38 = vsub.f32 %v2804_v20, %v2916_v61  ;;  %v667_v40 = vmul.f32 %v4331_v44, %v3177_v36  ;;  %v4332_v52 = vld [vmem:[#allocation34_spill] sm:$0xff] }
 0x117   :  { %1749 = vperm.xlu1 %2517, %v2714_v1   ;;  %v3393_v7 = vpop.permute.xlu1 %705  ;;  %v427_v1 = vrot.slane %v225_v11, %v2942_v25  ;;  %v666_v11 = vmul.f32 %v4330_v47, %v3177_v36  ;;  %v461_v32 = vadd.f32 %v445_v28, %v333_v50  ;;  %v862_v29 = vmul.f32 %v4332_v52, %v3226_v43  ;;  %v4335_v47 = vld [vmem:[#allocation28_spill] sm:$0xff]  ;;  %v4336_v44 = vld [vmem:[#allocation70_spill] sm:$0xff] }
 0x118   :  { %v3399_v63 = vpop.permute.xlu0 %913  ;;  %v3414_v0 = vmul.f32 %v204_v12, %v4328_v31  ;;  %v3419_v14 = vmul.f32 %v204_v12, %v4329_v38  ;;  %v4333_v31 = vld [vmem:[#allocation36_spill] sm:$0xff]  ;;  %v4334_v12 = vld [vmem:[#allocation17_spill] sm:$0xff]  ;;  %v660_v46 = vmul.f32 %v4337_v53, %v4336_v44  ;;  %v467_v28 = vadd.f32 %v451_v10, %v339_v39 }
 0x119   :  { %4326 = vst [vmem:[#allocation80_spill] sm:$0xff] %v3399_v63  ;;  %2523 = vset.pattern.permute.xlu0 %v4243_v42  ;;  %v863_v42 = vmul.f32 %v4333_v31, %v3226_v43  ;;  %v336_v38 = vmul.f32 %v311_v37, %v4334_v12  ;;  %v337_v3 = vmul.f32 %v315_v58, %v4334_v12  ;;  %v4339_v43 = vld [vmem:[#allocation27_spill] sm:$0xff] }
 0x11a   :  { %1985 = vperm.xlu0 %2523, %v2722_v4   ;;  %v460_v4 = vadd.f32 %v444_v13, %v332_v16  ;;  %v448_v63 = vmul.f32 %v423_v34, %v4335_v47  ;;  %v449_v36 = vmul.f32 %v427_v1, %v4335_v47  ;;  %v4338_v16 = vld [vmem:[#allocation31_spill] sm:$0xff]  ;;  %v466_v13 = vadd.f32 %v450_v26, %v338_v15 }
 0x11b   :  { %1757 = vperm.xlu1 %2517, %v2728_v6   ;;  %v714_v24 = vpop.permute.xlu1 %713  ;;  %v661_v50 = vmul.f32 %v4338_v16, %v4336_v44  ;;  %v3440_v52 = vmul.f32 %v399_v2, %v4339_v43  ;;  %v3443_v37 = vmul.f32 %v403_v17, %v4339_v43  ;;  %v303_v58 = vrot.slane %v3414_v0, %v2873_v45  ;;  %v4340_v12 = vld [vmem:[#allocation39_spill] sm:$0xff]  ;;  %v4341_v44 = vld [vmem:[#allocation40_spill] sm:$0xff] }
 0x11c   :  { %v922_v20 = vpop.permute.xlu0 %921  ;;  %v307_v34 = vrot.slane %v3419_v14, %v2873_v45  ;;  %v676_v1 = vadd.f32 %v660_v46, %v460_v4  ;;  %v878_v17 = vadd.f32 %v862_v29, %v3361_v30  ;;  %v879_v39 = vadd.f32 %v863_v42, %v671_v48  ;;  %v4343_v4 = vld [vmem:[#allocation62_spill] sm:$0xff]  ;;  %v4345_v48 = vld [vmem:[#allocation64_spill] sm:$0xff]  ;;  %v4347_v42 = vld [vmem:[#allocation41_spill] sm:$0xff] }
 0x11d   :  { %v677_v2 = vadd.f32 %v661_v50, %v461_v32  ;;  %v464_v26 = vadd.f32 %v448_v63, %v336_v38  ;;  %v465_v10 = vadd.f32 %v449_v36, %v337_v3  ;;  %v664_v47 = vmul.f32 %v4340_v12, %v3265_v33  ;;  %v4344_v50 = vld [vmem:[#allocation63_spill] sm:$0xff]  ;;  %v4348_v38 = vld [vmem:[#allocation42_spill] sm:$0xff] }
 0x11e   :  { %1997 = vperm.xlu0 %2523, %v2728_v6   ;;  %v665_v16 = vmul.f32 %v4341_v44, %v3265_v33  ;;  %v682_v43 = vadd.f32 %v666_v11, %v466_v13  ;;  %v683_v53 = vadd.f32 %v667_v40, %v467_v28  ;;  %v4342_v6 = vld [vmem:[#allocation61_spill] sm:$0xff]  ;;  %v875_v32 = vmul.f32 %v4343_v4, %v714_v24  ;;  %v4350_v36 = vld [vmem:[#allocation66_spill] sm:$0xff]  ;;  %v3471_v13 = vld [vmem:[#allocation7] sm:$0xf] }
 0x11f   :  { %1765 = vperm.xlu1 %2517, %v2734_v8   ;;  %v874_v46 = vmul.f32 %v4342_v6, %v714_v24  ;;  %v1082_v30 = vmul.f32 %v4344_v50, %v922_v20  ;;  %v1083_v63 = vmul.f32 %v4345_v48, %v922_v20  ;;  %v4346_v3 = vmov 11   ;;  %v4349_v11 = vld [vmem:[#allocation65_spill] sm:$0xff] }
 0x120   :  { %v898_v15 = vpop.permute.xlu1 %897  ;;  %v868_v29 = vmul.f32 %v4347_v42, %v3273_v56  ;;  %v869_v33 = vmul.f32 %v4348_v38, %v3273_v56  ;;  %v891_v20 = vadd.f32 %v875_v32, %v683_v53  ;;  %v4351_v6 = vld [vmem:[#allocation69_spill] sm:$0xff]  ;;  %v680_v50 = vadd.f32 %v664_v47, %v464_v26  ;;  %v4354_v47 = vld [vmem:[#allocation68_spill] sm:$0xff]  ;;  %v4355_v32 = vld [vmem:[#allocation71_spill] sm:$0xff] }
 0x121   :  { %v1106_v31 = vpop.permute.xlu0 %1105  ;;  %v1070_v40 = vmul.f32 %v4349_v11, %v898_v15  ;;  %v890_v28 = vadd.f32 %v874_v46, %v682_v43  ;;  %v681_v48 = vadd.f32 %v665_v16, %v465_v10  ;;  %v4252_v42 = vmov 14   ;;  %v4353_v11 = vld [vmem:[#allocation47_spill] sm:$0xff] }
 0x122   :  { %2005 = vperm.xlu0 %2523, %v2734_v8   ;;  %v1071_v8 = vmul.f32 %v4350_v36, %v898_v15  ;;  %v1278_v12 = vmul.f32 %v4351_v6, %v1106_v31  ;;  %v1279_v44 = vmul.f32 %v3218_v59, %v1106_v31  ;;  %v4352_v15 = vld [vmem:[#allocation45_spill] sm:$0xff]  ;;  %v873_v36 = vmul.f32 %v4353_v11, %v3306_v18  ;;  %v4364_v11 = vld [vmem:[#allocation16_spill] sm:$0xff] }
 0x123   :  { %2518 = vset.pattern.permute.xlu1 %v4346_v3  ;;  %v1086_v56 = vadd.f32 %v1070_v40, %v878_v17  ;;  %v872_v38 = vmul.f32 %v4352_v15, %v3306_v18  ;;  %v3483_v43 = vadd.f32 %v1082_v30, %v890_v28  ;;  %v3485_v53 = vadd.f32 %v1083_v63, %v891_v20  ;;  %v4357_v40 = vld [vmem:[#allocation44_spill] sm:$0xff] }
 0x124   :  { %1869 = vperm.xlu1 %2518, %v3471_v13   ;;  %v3474_v24 = vpop.permute.xlu1 %901  ;;  %v1087_v3 = vadd.f32 %v1071_v8, %v879_v39  ;;  %v884_v59 = vadd.f32 %v868_v29, %v676_v1  ;;  %v885_v26 = vadd.f32 %v869_v33, %v677_v2  ;;  %v3492_v39 = vld [vmem:[#allocation7 + $0x8] sm:$0xf]  ;;  %v668_v1 = vadd.f32 %v3338_v35, %v3346_v21  ;;  %v4356_v29 = vld [vmem:[#allocation43_spill] sm:$0xff] }
 0x125   :  { %v1118_v4 = vpop.permute.xlu0 %1117  ;;  %v3488_v10 = vadd.f32 %v1278_v12, %v1086_v56  ;;  %v669_v2 = vadd.f32 %v3342_v41, %v3355_v22  ;;  %v860_v33 = vmul.f32 %v4356_v29, %v3304_v55  ;;  %v861_v8 = vmul.f32 %v4357_v40, %v3304_v55  ;;  %v4359_v12 = vld [vmem:[#allocation50_spill] sm:$0xff]  ;;  %v4360_v21 = vld [vmem:[#allocation51_spill] sm:$0xff]  ;;  %v4363_v56 = vld [vmem:[#allocation73_spill] sm:$0xff] }
 0x126   :  { %2524 = vset.pattern.permute.xlu0 %v4252_v42  ;;  %v3490_v17 = vadd.f32 %v1279_v44, %v1087_v3  ;;  %v1284_v46 = vmul.f32 %v3224_v19, %v1118_v4  ;;  %v1285_v30 = vmul.f32 %v4355_v32, %v1118_v4  ;;  %v888_v28 = vadd.f32 %v872_v38, %v680_v50  ;;  %v3507_v19 = vld [vmem:[#allocation7 + $0xc] sm:$0xf]  ;;  %v4361_v55 = vld [vmem:[#allocation74_spill] sm:$0xff]  ;;  %v4362_v50 = vld [vmem:[#allocation72_spill] sm:$0xff] }
 0x127   :  { %2093 = vperm.xlu0 %2524, %v3471_v13   ;;  %v889_v20 = vadd.f32 %v873_v36, %v681_v48  ;;  %4358 = vst [vmem:[#allocation46_spill] sm:$0xff] %v3507_v19  ;;  %v1068_v35 = vmul.f32 %v4359_v12, %v3344_v9  ;;  %v1069_v41 = vmul.f32 %v4360_v21, %v3344_v9  ;;  %v4365_v36 = vld [vmem:[#allocation35_spill] sm:$0xff]  ;;  %v195_v29 = vstv %s3236_s24  ;;  %v3549_v40 = vld [vmem:[#allocation7 + $0x14] sm:$0xf] }
 0x128   :  { %1877 = vperm.xlu1 %2518, %v3492_v39   ;;  %v910_v31 = vpop.permute.xlu1 %909  ;;  %v334_v9 = vmul.f32 %v303_v58, %v4364_v11  ;;  %v4373_v21 = vld [vmem:[#allocation55_spill] sm:$0xff] }
 0x129   :  { %v1076_v16 = vmul.f32 %v4354_v47, %v910_v31  ;;  %v1077_v18 = vmul.f32 %v3221_v57, %v910_v31  ;;  %v1126_v63 = vpop.permute.xlu0 %1125  ;;  %v4367_v31 = vrot.slane %v3419_v14, %v2942_v25  ;;  %v459_v14 = vadd.f32 %v3443_v37, %v3387_v51  ;;  %v4372_v51 = vld [vmem:[#allocation76_spill] sm:$0xff] }
 0x12a   :  { %v1288_v44 = vmul.f32 %v3243_v62, %v1126_v63  ;;  %v1289_v4 = vmul.f32 %v4361_v55, %v1126_v63  ;;  %v335_v62 = vmul.f32 %v307_v34, %v4364_v11  ;;  %v4368_v34 = vld [vmem:[#allocation24_spill] sm:$0xff]  ;;  %v4376_v11 = vld [vmem:[#allocation53_spill] sm:$0xff] }
 0x12b   :  { %v1092_v57 = vadd.f32 %v1076_v16, %v884_v59  ;;  %v1093_v6 = vadd.f32 %v1077_v18, %v885_v26  ;;  %2105 = vperm.xlu0 %2524, %v3507_v19   ;;  %v4366_v59 = vrot.slane %v3414_v0, %v2942_v25  ;;  %v447_v47 = vmul.f32 %v4367_v31, %v4365_v36 }
 0x12c   :  { %1881 = vperm.xlu1 %2518, %v3507_v19   ;;  %v918_v22 = vpop.permute.xlu1 %917  ;;  %v876_v18 = vadd.f32 %v860_v33, %v668_v1  ;;  %v659_v63 = vmul.f32 %v4368_v34, %v3083_v60  ;;  %v458_v0 = vadd.f32 %v3440_v52, %v3384_v23  ;;  %v4369_v60 = vld [vmem:[#allocation48_spill] sm:$0xff]  ;;  %v4371_v52 = vld [vmem:[#allocation75_spill] sm:$0xff] }
 0x12d   :  { %v1080_v48 = vmul.f32 %v4362_v50, %v918_v22  ;;  %v1081_v3 = vmul.f32 %v4363_v56, %v918_v22  ;;  %v3519_v15 = vadd.f32 %v1284_v46, %v1092_v57  ;;  %v3521_v38 = vadd.f32 %v1285_v30, %v1093_v6  ;;  %v3539_v30 = vld [vmem:[#allocation7 + $0x10] sm:$0xf]  ;;  %v4370_v57 = vld [vmem:[#allocation49_spill] sm:$0xff] }
 0x12e   :  { %v446_v26 = vmul.f32 %v4366_v59, %v4365_v36  ;;  %v1310_v16 = vpop.permute.xlu0 %1309  ;;  %v877_v46 = vadd.f32 %v861_v8, %v669_v2  ;;  %v1084_v1 = vadd.f32 %v1068_v35, %v876_v18  ;;  %v867_v23 = vmul.f32 %v4370_v57, %v3368_v5  ;;  %v4374_v22 = vld [vmem:[#allocation25_spill] sm:$0xff]  ;;  %v4377_v59 = vld [vmem:[#allocation56_spill] sm:$0xff] }
 0x12f   :  { %v1096_v32 = vadd.f32 %v1080_v48, %v888_v28  ;;  %v1097_v58 = vadd.f32 %v1081_v3, %v889_v20  ;;  %2109 = vperm.xlu0 %2524, %v3539_v30   ;;  %v866_v20 = vmul.f32 %v4369_v60, %v3368_v5  ;;  %v662_v35 = vmul.f32 %v4374_v22, %v4373_v21  ;;  %v3568_v3 = vld [vmem:[#allocation7 + $0x1c] sm:$0xf]  ;;  %v4384_v60 = vld [vmem:[#allocation52_spill] sm:$0xff] }
 0x130   :  { %1889 = vperm.xlu1 %2518, %v3549_v40   ;;  %v1085_v2 = vadd.f32 %v1069_v41, %v877_v46  ;;  %v4375_v41 = vld [vmem:[#allocation29_spill] sm:$0xff]  ;;  %v462_v55 = vadd.f32 %v446_v26, %v334_v9  ;;  %v674_v50 = vadd.f32 %v3350_v54, %v458_v0  ;;  %v675_v48 = vadd.f32 %v659_v63, %v459_v14  ;;  %v4379_v26 = vld [vmem:[#allocation58_spill] sm:$0xff]  ;;  %v4391_v22 = vld [vmem:[#allocation59_spill] sm:$0xff] }
 0x131   :  { %v1102_v33 = vpop.permute.xlu1 %1101  ;;  %v3552_v8 = vadd.f32 %v1288_v44, %v1096_v32  ;;  %v3554_v28 = vadd.f32 %v1289_v4, %v1097_v58  ;;  %v663_v44 = vmul.f32 %v4375_v41, %v4373_v21  ;;  %v463_v4 = vadd.f32 %v447_v47, %v335_v62  ;;  %v4378_v9 = vld [vmem:[#allocation57_spill] sm:$0xff]  ;;  %v4380_v63 = vld [vmem:[#allocation14_spill] sm:$0xff]  ;;  %v4390_v21 = vld [vmem:[#allocation80_spill] sm:$0xff] }
 0x132   :  { %v1276_v6 = vmul.f32 %v4371_v52, %v1102_v33  ;;  %v1277_v37 = vmul.f32 %v4372_v51, %v1102_v33  ;;  %v1322_v12 = vpop.permute.xlu0 %1321  ;;  %v1074_v36 = vmul.f32 %v4376_v11, %v3374_v27  ;;  %v1075_v31 = vmul.f32 %v4377_v59, %v3374_v27  ;;  %v4392_v41 = vld [vmem:[#allocation60_spill] sm:$0xff]  ;;  %v4394_v11 = vld [vmem:[#allocation78_spill] sm:$0xff] }
 0x133   :  { %2113 = vperm.xlu0 %2524, %v3549_v40   ;;  %v870_v62 = vmul.f32 %v4378_v9, %v3393_v7  ;;  %v871_v47 = vmul.f32 %v4379_v26, %v3393_v7  ;;  %v882_v18 = vadd.f32 %v866_v20, %v674_v50  ;;  %v883_v46 = vadd.f32 %v867_v23, %v675_v48  ;;  %v4385_v20 = vld [vmem:[#allocation19_spill] sm:$0xff]  ;;  %v4387_v23 = vld [vmem:[#allocation54_spill] sm:$0xff] }
 0x134   :  { %v1292_v56 = vadd.f32 %v1276_v6, %v1084_v1  ;;  %v1293_v5 = vadd.f32 %v1277_v37, %v1085_v2  ;;  %1897 = vperm.xlu1 %2518, %v3568_v3   ;;  %v4381_v0 = vsub.f32 %v4380_v63, %v2886_v49  ;;  %v4382_v27 = vsub.f32 %v4380_v63, %v2916_v61  ;;  %v4389_v6 = vld [vmem:[#allocation23_spill] sm:$0xff] }
 0x135   :  { %v3579_v54 = vpop.permute.xlu1 %1109  ;;  %v678_v2 = vadd.f32 %v662_v35, %v462_v55  ;;  %v679_v33 = vadd.f32 %v663_v44, %v463_v4  ;;  %v4383_v7 = vmov 12   ;;  %v4388_v49 = vrot.slane %v4385_v20, %v4387_v23  ;;  %v3609_v55 = vld [vmem:[#allocation7 + $0x4] sm:$0xf] }
 0x136   :  { %v3581_v32 = vadd.f32 %v1310_v16, %v1292_v56  ;;  %v3583_v58 = vadd.f32 %v1310_v16, %v1293_v5  ;;  %v1330_v34 = vpop.permute.xlu0 %1329  ;;  %v216_v14 = vmul.f32 %v195_v29, %v4381_v0  ;;  %v217_v1 = vmul.f32 %v195_v29, %v4382_v27  ;;  %v4393_v56 = vld [vmem:[#allocation77_spill] sm:$0xff]  ;;  %v4396_v0 = vld [vmem:[#allocation22_spill] sm:$0xff] }
 0x137   :  { %2121 = vperm.xlu0 %2524, %v3568_v3   ;;  %v4386_v16 = vrot.slane %v4385_v20, %v4384_v60  ;;  %v1259_v52 = vrot.slane %v4388_v49, %v4384_v60  ;;  %v1191_v61 = vrot.slane %v4389_v6, %v4384_v60  ;;  %v1195_v29 = vrot.slane %v4389_v6, %v4387_v23 }
 0x138   :  { %2521 = vset.pattern.permute.xlu1 %v4383_v7  ;;  %v886_v51 = vadd.f32 %v870_v62, %v678_v2  ;;  %v887_v37 = vadd.f32 %v871_v47, %v679_v33  ;;  %v1078_v35 = vmul.f32 %v4391_v22, %v4390_v21  ;;  %v1079_v44 = vmul.f32 %v4392_v41, %v4390_v21  ;;  %v4395_v47 = vld [vmem:[#allocation20_spill] sm:$0xff] }
 0x139   :  { %v1255_v57 = vrot.slane %v4386_v16, %v4384_v60  ;;  %1937 = vperm.xlu1 %2521, %v3609_v55   ;;  %v1114_v4 = vpop.permute.xlu1 %1113  ;;  %v1090_v50 = vadd.f32 %v1074_v36, %v882_v18  ;;  %v1091_v48 = vadd.f32 %v1075_v31, %v883_v46  ;;  %v279_v62 = vrot.slane %v216_v14, %v2873_v45 }
 0x13a   :  { %v1282_v5 = vmul.f32 %v4393_v56, %v1114_v4  ;;  %v1283_v59 = vmul.f32 %v4394_v11, %v1114_v4  ;;  %v1338_v9 = vpop.permute.xlu0 %1337  ;;  %v283_v26 = vrot.slane %v217_v1, %v2873_v45  ;;  %v735_v63 = vrot.slane %v4395_v47, %v2942_v25  ;;  %v3639_v56 = vld [vmem:[#allocation7 + $0x18] sm:$0xf] }
 0x13b   :  { %v739_v27 = vrot.slane %v4395_v47, %v4396_v0  ;;  %v4253_v2 = vmov 15   ;;  %v391_v36 = vrot.slane %v216_v14, %v2942_v25  ;;  %v395_v31 = vrot.slane %v217_v1, %v2942_v25  ;;  %v4397_v14 = vld [vmem:[#allocation15_spill] sm:$0xff] }
 0x13c   :  { %2529 = vset.pattern.permute.xlu0 %v4253_v2  ;;  %v1298_v18 = vadd.f32 %v1282_v5, %v1090_v50  ;;  %v1299_v46 = vadd.f32 %v1283_v59, %v1091_v48  ;;  %v1094_v33 = vadd.f32 %v1078_v35, %v886_v51  ;;  %v1095_v7 = vadd.f32 %v1079_v44, %v887_v37  ;;  %v4398_v50 = vld [vmem:[#allocation18_spill] sm:$0xff]  ;;  %v4400_v35 = vld [vmem:[#allocation32_spill] sm:$0xff]  ;;  %v4402_v59 = vld [vmem:[#allocation33_spill] sm:$0xff] }
 0x13d   :  { %2201 = vperm.xlu0 %2529, %v3507_v19   ;;  %1941 = vperm.xlu1 %2521, %v3492_v39   ;;  %v1122_v20 = vpop.permute.xlu1 %1121  ;;  %v1271_v16 = vrot.slane %v1191_v61, %v4384_v60  ;;  %v1275_v49 = vrot.slane %v1195_v29, %v4384_v60  ;;  %v328_v4 = vmul.f32 %v279_v62, %v4397_v14  ;;  %v4401_v61 = vld [vmem:[#allocation21_spill] sm:$0xff] }
 0x13e   :  { %v1346_v6 = vadd.f32 %v1322_v12, %v1298_v18  ;;  %v1347_v21 = vadd.f32 %v1322_v12, %v1299_v46  ;;  %v1286_v22 = vmul.f32 %v1255_v57, %v1122_v20  ;;  %v1287_v41 = vmul.f32 %v1259_v52, %v1122_v20 }
 0x13f   :  { %v329_v1 = vmul.f32 %v283_v26, %v4397_v14  ;;  %v4399_v51 = vrot.slane %v4395_v47, %v4398_v50  ;;  %v943_v44 = vrot.slane %v4395_v47, %v4400_v35  ;;  %v3635_v48 = vpop.permute.xlu0 %1377  ;;  %v440_v29 = vmul.f32 %v391_v36, %v4401_v61 }
 0x140   :  { %v441_v12 = vmul.f32 %v395_v31, %v4401_v61  ;;  %v1302_v57 = vadd.f32 %v1286_v22, %v1094_v33  ;;  %v1303_v52 = vadd.f32 %v1287_v41, %v1095_v7  ;;  %v815_v5 = vrot.slane %v735_v63, %v2942_v25 }
 0x141   :  { %v611_v37 = vrot.slane %v4399_v51, %v2873_v45  ;;  %2213 = vperm.xlu0 %2529, %v3639_v56   ;;  %v819_v11 = vrot.slane %v739_v27, %v2942_v25  ;;  %v947_v62 = vrot.slane %v4395_v47, %v4402_v59  ;;  %1949 = vperm.xlu1 %2521, %v3539_v30   ;;  %v1130_v26 = vpop.permute.xlu1 %1129  ;;  %v4250_v14 = vmov 16  }
 0x142   :  { %v1350_v0 = vadd.f32 %v1330_v34, %v1302_v57  ;;  %v1351_v36 = vadd.f32 %v1330_v34, %v1303_v52  ;;  %v1290_v18 = vmul.f32 %v1271_v16, %v1130_v26  ;;  %v1291_v31 = vmul.f32 %v1275_v49, %v1130_v26  ;;  %v4403_v34 = vld [vmem:[#allocation67_spill] sm:$0xff]  ;;  %v4404_v16 = vld [vmem:[#allocation26_spill] sm:$0xff] }
 0x143   :  { %v1023_v46 = vrot.slane %v943_v44, %v4400_v35  ;;  %v1151_v33 = vrot.slane %v4395_v47, %v4384_v60  ;;  %v1155_v63 = vrot.slane %v4395_v47, %v4387_v23  ;;  %v3652_v7 = vpop.permute.xlu0 %1389  ;;  %v456_v27 = vadd.f32 %v440_v29, %v328_v4  ;;  %v4405_v23 = vld [vmem:[#allocation79_spill] sm:$0xff] }
 0x144   :  { %v457_v20 = vadd.f32 %v441_v12, %v329_v1  ;;  %v1306_v22 = vadd.f32 %v1290_v18, %v3483_v43  ;;  %v1307_v41 = vadd.f32 %v1291_v31, %v3485_v53  ;;  %v656_v49 = vmul.f32 %v4404_v16, %v4403_v34 }
 0x145   :  { %2532 = vset.pattern.permute.xlu0 %v4250_v14  ;;  %v657_v50 = vmul.f32 %v611_v37, %v4403_v34  ;;  %v1027_v51 = vrot.slane %v947_v62, %v4400_v35  ;;  %1957 = vperm.xlu1 %2521, %v3639_v56   ;;  %v864_v47 = vmul.f32 %v815_v5, %v4405_v23  ;;  %v3666_v44 = vmax.f32 %v3581_v32, 0.0 }
 0x146   :  { %2285 = vperm.xlu0 %2532, %v3471_v13   ;;  %v865_v43 = vmul.f32 %v819_v11, %v4405_v23  ;;  %v1354_v4 = vadd.f32 %v1338_v9, %v1306_v22  ;;  %v1355_v53 = vadd.f32 %v1338_v9, %v1307_v41  ;;  %v1314_v1 = vpop.permute.xlu1 %1313  ;;  %v3669_v61 = vmax.f32 %v3583_v58, 0.0 }
 0x147   :  { %v1342_v37 = vadd.f32 %v1314_v1, %v3488_v10  ;;  %v1343_v29 = vadd.f32 %v1314_v1, %v3490_v17  ;;  %v3673_v12 = vpop.permute.xlu0 %1397  ;;  %v672_v57 = vadd.f32 %v656_v49, %v456_v27  ;;  %v673_v52 = vadd.f32 %v657_v50, %v457_v20 }
 0x148   :  { %v1231_v5 = vrot.slane %v1151_v33, %v4384_v60  ;;  %v1235_v11 = vrot.slane %v1155_v63, %v4384_v60  ;;  %v1072_v9 = vmul.f32 %v1023_v46, %v3474_v24  ;;  %v1073_v32 = vmul.f32 %v1027_v51, %v3474_v24 }
 0x149   :  { %v3679_v59 = vmax.f32 %v1342_v37, 0.0  ;;  %v3681_v58 = vmax.f32 %v1343_v29, 0.0  ;;  %v4408_v62 = vmov 13   ;;  %v880_v10 = vadd.f32 %v864_v47, %v672_v57 }
 0x14a   :  { %2522 = vset.pattern.permute.xlu1 %v4408_v62  ;;  %2305 = vperm.xlu0 %2532, %v3549_v40   ;;  %v881_v17 = vadd.f32 %v865_v43, %v673_v52  ;;  %v1318_v26 = vpop.permute.xlu1 %1317  ;;  %v3686_v18 = vmax.f32 %v1346_v6, 0.0  ;;  %v3688_v31 = vmax.f32 %v1347_v21, 0.0  ;;  %v1519_v24 = vrot.slane %v3666_v44, %v2942_v25 }
 0x14b   :  { %4406 = vst [vmem:[#allocation37_spill] sm:$0xff] %v3679_v59  ;;  %4407 = vst [vmem:[#allocation38_spill] sm:$0xff] %v3681_v58  ;;  %1981 = vperm.xlu1 %2522, %v3471_v13   ;;  %v1523_v46 = vrot.slane %v3669_v61, %v2942_v25  ;;  %v1280_v33 = vmul.f32 %v1231_v5, %v3579_v54  ;;  %v1281_v63 = vmul.f32 %v1235_v11, %v3579_v54 }
 0x14c   :  { %v1486_v27 = vpop.permute.xlu0 %1485  ;;  %v1415_v20 = vrot.slane %v3679_v59, %v2873_v45  ;;  %v1419_v6 = vrot.slane %v3681_v58, %v2873_v45  ;;  %v1088_v22 = vadd.f32 %v1072_v9, %v880_v10  ;;  %v1089_v21 = vadd.f32 %v1073_v32, %v881_v17 }
 0x14d   :  { %v1580_v41 = vmul.f32 %v1519_v24, %v1486_v27  ;;  %v1581_v34 = vmul.f32 %v1523_v46, %v1486_v27  ;;  %v3701_v16 = vmax.f32 %v1350_v0, 0.0  ;;  %v3703_v49 = vmax.f32 %v1351_v36, 0.0 }
 0x14e   :  { %2313 = vperm.xlu0 %2532, %v3568_v3   ;;  %v1326_v54 = vpop.permute.xlu1 %1325  ;;  %v3707_v50 = vmul.f32 %v1415_v20, %v3635_v48  ;;  %v3710_v51 = vmul.f32 %v1419_v6, %v3635_v48  ;;  %v1543_v43 = vrot.slane %v3686_v18, %v2942_v25  ;;  %v1547_v0 = vrot.slane %v3688_v31, %v2942_v25 }
 0x14f   :  { %1989 = vperm.xlu1 %2522, %v3492_v39   ;;  %v1348_v23 = vadd.f32 %v1326_v54, %v3519_v15  ;;  %v1349_v47 = vadd.f32 %v1326_v54, %v3521_v38  ;;  %v1296_v36 = vadd.f32 %v1280_v33, %v1088_v22  ;;  %v1297_v1 = vadd.f32 %v1281_v63, %v1089_v21 }
 0x150   :  { %v1498_v37 = vpop.permute.xlu0 %1497  ;;  %v1559_v11 = vrot.slane %v3701_v16, %v2942_v25  ;;  %v1563_v9 = vrot.slane %v3703_v49, %v2942_v25  ;;  %v3731_v32 = vmax.f32 %v1354_v4, 0.0  ;;  %v3733_v62 = vmax.f32 %v1355_v53, 0.0 }
 0x151   :  { %v3718_v29 = vmax.f32 %v1348_v23, 0.0  ;;  %v3720_v57 = vmax.f32 %v1349_v47, 0.0  ;;  %v3722_v52 = vmul.f32 %v1543_v43, %v1498_v37  ;;  %v3724_v48 = vmul.f32 %v1547_v0, %v1498_v37 }
 0x152   :  { %v1344_v15 = vadd.f32 %v1318_v26, %v1296_v36  ;;  %v1345_v5 = vadd.f32 %v1318_v26, %v1297_v1  ;;  %v1334_v38 = vpop.permute.xlu1 %1333  ;;  %v1407_v26 = vrot.slane %v3666_v44, %v2873_v45  ;;  %v1411_v46 = vrot.slane %v3669_v61, %v2873_v45 }
 0x153   :  { %1993 = vperm.xlu1 %2522, %v3507_v19   ;;  %v1352_v10 = vadd.f32 %v1334_v38, %v3552_v8  ;;  %v1353_v17 = vadd.f32 %v1334_v38, %v3554_v28  ;;  %v1439_v33 = vrot.slane %v3718_v29, %v2873_v45  ;;  %v1443_v4 = vrot.slane %v3720_v57, %v2873_v45 }
 0x154   :  { %v1506_v24 = vpop.permute.xlu0 %1505  ;;  %v3749_v28 = vmax.f32 %v1344_v15, 0.0  ;;  %v3751_v20 = vmax.f32 %v1345_v5, 0.0  ;;  %v1575_v54 = vrot.slane %v3731_v32, %v2942_v25  ;;  %v1579_v23 = vrot.slane %v3733_v62, %v2942_v25 }
 0x155   :  { %v3745_v63 = vmax.f32 %v1352_v10, 0.0  ;;  %v3747_v53 = vmax.f32 %v1353_v17, 0.0  ;;  %v1590_v8 = vmul.f32 %v1559_v11, %v1506_v24  ;;  %v1591_v27 = vmul.f32 %v1563_v9, %v1506_v24 }
 0x156   :  { %v3755_v6 = vmul.f32 %v1439_v33, %v3652_v7  ;;  %v3758_v22 = vmul.f32 %v1443_v4, %v3652_v7  ;;  %v1423_v9 = vrot.slane %v3749_v28, %v2873_v45  ;;  %v1427_v10 = vrot.slane %v3751_v20, %v2873_v45 }
 0x157   :  { %2001 = vperm.xlu1 %2522, %v3549_v40   ;;  %v1374_v21 = vpop.permute.xlu1 %1373  ;;  %v1455_v47 = vrot.slane %v3745_v63, %v2873_v45  ;;  %v1459_v43 = vrot.slane %v3747_v53, %v2873_v45  ;;  %v1431_v4 = vrot.slane %v3686_v18, %v2873_v45  ;;  %v1699_v14 = vrot.slane %v3747_v53, %v4400_v35 }
 0x158   :  { %v1468_v0 = vmul.f32 %v1407_v26, %v1374_v21  ;;  %v1469_v36 = vmul.f32 %v1411_v46, %v1374_v21  ;;  %v1514_v1 = vpop.permute.xlu0 %1513  ;;  %v1435_v21 = vrot.slane %v3688_v31, %v2873_v45 }
 0x159   :  { %v1594_v37 = vmul.f32 %v1575_v54, %v1514_v1  ;;  %v1595_v15 = vmul.f32 %v1579_v23, %v1514_v1  ;;  %v3769_v7 = vmul.f32 %v1455_v47, %v3673_v12  ;;  %v3772_v5 = vmul.f32 %v1459_v43, %v3673_v12 }
 0x15a   :  { %v3774_v38 = vadd.f32 %v1580_v41, %v1468_v0  ;;  %v3776_v11 = vadd.f32 %v1581_v34, %v1469_v36  ;;  %v1655_v12 = vrot.slane %v3679_v59, %v4400_v35  ;;  %v1659_v41 = vrot.slane %v3681_v58, %v4400_v35 }
 0x15b   :  { %2009 = vperm.xlu1 %2522, %v3568_v3   ;;  %v1382_v17 = vpop.permute.xlu1 %1381  ;;  %v1679_v43 = vrot.slane %v3718_v29, %v4400_v35  ;;  %v1683_v0 = vrot.slane %v3720_v57, %v4400_v35  ;;  %v1447_v1 = vrot.slane %v3701_v16, %v2873_v45 }
 0x15c   :  { %v3783_v24 = vmul.f32 %v1423_v9, %v1382_v17  ;;  %v3785_v26 = vmul.f32 %v1427_v10, %v1382_v17  ;;  %v1451_v9 = vrot.slane %v3703_v49, %v2873_v45 }
 0x15d   :  { %v1618_v34 = vpop.permute.xlu0 %1617 }
 0x15e   :  { %v3791_v46 = vmul.f32 %v1655_v12, %v1618_v34  ;;  %v3793_v33 = vmul.f32 %v1659_v41, %v1618_v34 }
 0x15f   :  { %2525 = vset.pattern.permute.xlu1 %v4252_v42  ;;  %v1386_v54 = vpop.permute.xlu1 %1385  ;;  %v1775_v42 = vrot.slane %v3666_v44, %v4384_v60 }
 0x160   :  { %2097 = vperm.xlu1 %2525, %v3609_v55   ;;  %v1474_v23 = vmul.f32 %v1431_v4, %v1386_v54  ;;  %v1475_v47 = vmul.f32 %v1435_v21, %v1386_v54  ;;  %v1695_v54 = vrot.slane %v3745_v63, %v4400_v35 }
 0x161   :  { %v1630_v36 = vpop.permute.xlu0 %1629 }
 0x162   :  { %v3810_v10 = vadd.f32 %v3722_v52, %v1474_v23  ;;  %v3813_v17 = vadd.f32 %v3724_v48, %v1475_v47  ;;  %v3815_v12 = vmul.f32 %v1679_v43, %v1630_v36  ;;  %v3817_v41 = vmul.f32 %v1683_v0, %v1630_v36 }
 0x163   :  { %v1394_v34 = vpop.permute.xlu1 %1393  ;;  %v1463_v48 = vrot.slane %v3731_v32, %v2873_v45  ;;  %v1467_v23 = vrot.slane %v3733_v62, %v2873_v45  ;;  %v1779_v45 = vrot.slane %v3669_v61, %v4384_v60 }
 0x164   :  { %2101 = vperm.xlu1 %2525, %v3492_v39   ;;  %v1478_v4 = vmul.f32 %v1447_v1, %v1394_v34  ;;  %v1479_v21 = vmul.f32 %v1451_v9, %v1394_v34 }
 0x165   :  { %v1638_v52 = vpop.permute.xlu0 %1637 }
 0x166   :  { %v3828_v47 = vadd.f32 %v1590_v8, %v1478_v4  ;;  %v3830_v43 = vadd.f32 %v1591_v27, %v1479_v21  ;;  %v3832_v0 = vmul.f32 %v1695_v54, %v1638_v52  ;;  %v3834_v36 = vmul.f32 %v1699_v14, %v1638_v52 }
 0x167   :  { %v1402_v1 = vpop.permute.xlu1 %1401  ;;  %v1527_v54 = vrot.slane %v3679_v59, %v2942_v25  ;;  %v1531_v52 = vrot.slane %v3681_v58, %v2942_v25  ;;  %v1819_v58 = vrot.slane %v3703_v49, %v4384_v60 }
 0x168   :  { %2526 = vset.pattern.permute.xlu1 %v4253_v2  ;;  %v1482_v9 = vmul.f32 %v1463_v48, %v1402_v1  ;;  %v1483_v34 = vmul.f32 %v1467_v23, %v1402_v1 }
 0x169   :  { %2193 = vperm.xlu1 %2526, %v3609_v55  }
 0x16a   :  { %v3842_v8 = vadd.f32 %v1594_v37, %v1482_v9  ;;  %v3844_v27 = vadd.f32 %v1595_v15, %v1483_v34  ;;  %v1742_v4 = vpop.permute.xlu0 %1741  ;;  %v1799_v37 = vrot.slane %v3686_v18, %v4384_v60  ;;  %v1535_v9 = vrot.slane %v3749_v28, %v2942_v25 }
 0x16b   :  { %v3846_v14 = vmul.f32 %v1775_v42, %v1742_v4  ;;  %v3848_v21 = vmul.f32 %v1779_v45, %v1742_v4  ;;  %v1803_v42 = vrot.slane %v3688_v31, %v4384_v60  ;;  %v1539_v34 = vrot.slane %v3751_v20, %v2942_v25 }
 0x16c   :  { %4409 = vst [vmem:[#allocation34_spill] sm:$0xff] %v3844_v27  ;;  %v1490_v48 = vpop.permute.xlu1 %1489 }
 0x16d   :  { %2197 = vperm.xlu1 %2526, %v3492_v39   ;;  %v1582_v23 = vmul.f32 %v1527_v54, %v1490_v48  ;;  %v1583_v1 = vmul.f32 %v1531_v52, %v1490_v48  ;;  %v1815_v48 = vrot.slane %v3701_v16, %v4384_v60 }
 0x16e   :  { %v1754_v15 = vpop.permute.xlu0 %1753 }
 0x16f   :  { %v1598_v45 = vadd.f32 %v1582_v23, %v3707_v50  ;;  %v1599_v4 = vadd.f32 %v1583_v1, %v3710_v51  ;;  %v3865_v2 = vmul.f32 %v1799_v37, %v1754_v15  ;;  %v3867_v54 = vmul.f32 %v1803_v42, %v1754_v15 }
 0x170   :  { %v1494_v52 = vpop.permute.xlu1 %1493  ;;  %v1551_v23 = vrot.slane %v3718_v29, %v2942_v25 }
 0x171   :  { %2189 = vperm.xlu1 %2526, %v3471_v13   ;;  %v1584_v59 = vmul.f32 %v1535_v9, %v1494_v52  ;;  %v1585_v19 = vmul.f32 %v1539_v34, %v1494_v52  ;;  %v3875_v27 = vadd.f32 %v3791_v46, %v1598_v45  ;;  %v3878_v50 = vadd.f32 %v3793_v33, %v1599_v4 }
 0x172   :  { %v1762_v51 = vpop.permute.xlu0 %1761  ;;  %v1555_v13 = vrot.slane %v3720_v57, %v2942_v25  ;;  %v4410_v46 = vmov 14  }
 0x173   :  { %v1600_v1 = vadd.f32 %v1584_v59, %v3783_v24  ;;  %v1601_v37 = vadd.f32 %v1585_v19, %v3785_v26  ;;  %v3886_v42 = vmul.f32 %v1815_v48, %v1762_v51  ;;  %v3888_v15 = vmul.f32 %v1819_v58, %v1762_v51 }
 0x174   :  { %v1502_v9 = vpop.permute.xlu1 %1501  ;;  %v1567_v19 = vrot.slane %v3745_v63, %v2942_v25  ;;  %v1571_v59 = vrot.slane %v3747_v53, %v2942_v25  ;;  %v4411_v48 = vmov 15   ;;  %v1647_v25 = vrot.slane %v3666_v44, %v4400_v35 }
 0x175   :  { %2527 = vset.pattern.permute.xlu1 %v4410_v46  ;;  %v1588_v33 = vmul.f32 %v1551_v23, %v1502_v9  ;;  %v1589_v34 = vmul.f32 %v1555_v13, %v1502_v9  ;;  %v1651_v46 = vrot.slane %v3669_v61, %v4400_v35  ;;  %v1663_v61 = vrot.slane %v3749_v28, %v4400_v35 }
 0x176   :  { %2117 = vperm.xlu1 %2527, %v3639_v56   ;;  %v3894_v52 = vpop.permute.xlu0 %1769 }
 0x177   :  { %v1604_v45 = vadd.f32 %v1588_v33, %v3755_v6  ;;  %v1605_v4 = vadd.f32 %v1589_v34, %v3758_v22 }
 0x178   :  { %v1510_v58 = vpop.permute.xlu1 %1509 }
 0x179   :  { %v1592_v24 = vmul.f32 %v1567_v19, %v1510_v58  ;;  %v1593_v26 = vmul.f32 %v1571_v59, %v1510_v58  ;;  %v3902_v51 = vadd.f32 %v3815_v12, %v1604_v45  ;;  %v3905_v6 = vadd.f32 %v3817_v41, %v1605_v4 }
 0x17a   :  { %2528 = vset.pattern.permute.xlu1 %v4411_v48  ;;  %v4412_v19 = vmov 16   ;;  %v1671_v58 = vrot.slane %v3686_v18, %v4400_v35  ;;  %v1691_v18 = vrot.slane %v3703_v49, %v4400_v35  ;;  %v1703_v49 = vrot.slane %v3731_v32, %v4400_v35 }
 0x17b   :  { %2205 = vperm.xlu1 %2528, %v3539_v30   ;;  %v1608_v22 = vadd.f32 %v1592_v24, %v3769_v7  ;;  %v1609_v23 = vadd.f32 %v1593_v26, %v3772_v5  ;;  %v3910_v13 = vpop.permute.xlu0 %1873  ;;  %v1675_v24 = vrot.slane %v3688_v31, %v4400_v35 }
 0x17d   :  { %v1614_v9 = vpop.permute.xlu1 %1613  ;;  %v3917_v12 = vadd.f32 %v3832_v0, %v1608_v22  ;;  %v3920_v41 = vadd.f32 %v3834_v36, %v1609_v23  ;;  %v1667_v0 = vrot.slane %v3751_v20, %v4400_v35 }
 0x17e   :  { %v1708_v33 = vmul.f32 %v1647_v25, %v1614_v9  ;;  %v1709_v34 = vmul.f32 %v1651_v46, %v1614_v9 }
 0x17f   :  { %2209 = vperm.xlu1 %2528, %v3549_v40   ;;  %v3923_v7 = vpop.permute.xlu0 %1885 }
 0x180   :  { %v1724_v5 = vadd.f32 %v1708_v33, %v3774_v38  ;;  %v1725_v44 = vadd.f32 %v1709_v34, %v3776_v11 }
 0x181   :  { %v1622_v45 = vpop.permute.xlu1 %1621 }
 0x182   :  { %v1712_v4 = vmul.f32 %v1663_v61, %v1622_v45  ;;  %v1713_v36 = vmul.f32 %v1667_v0, %v1622_v45  ;;  %v3933_v59 = vadd.f32 %v3846_v14, %v1724_v5  ;;  %v3936_v40 = vadd.f32 %v3848_v21, %v1725_v44 }
 0x183   :  { %2530 = vset.pattern.permute.xlu1 %v4412_v19  ;;  %v3943_v26 = vpop.permute.xlu0 %1893 }
 0x184   :  { %2289 = vperm.xlu1 %2530, %v3609_v55   ;;  %v1728_v38 = vadd.f32 %v1712_v4, %v1600_v1  ;;  %v1729_v11 = vadd.f32 %v1713_v36, %v1601_v37  ;;  %v1687_v55 = vrot.slane %v3701_v16, %v4400_v35 }
 0x185   :  { %v1626_v22 = vpop.permute.xlu1 %1625 }
 0x186   :  { %v1714_v23 = vmul.f32 %v1671_v58, %v1626_v22  ;;  %v1715_v25 = vmul.f32 %v1675_v24, %v1626_v22 }
 0x188   :  { %2293 = vperm.xlu1 %2530, %v3492_v39   ;;  %v1730_v14 = vadd.f32 %v1714_v23, %v3810_v10  ;;  %v1731_v21 = vadd.f32 %v1715_v25, %v3813_v17  ;;  %v3952_v46 = vpop.permute.xlu0 %1933  ;;  %v1707_v17 = vrot.slane %v3733_v62, %v4400_v35  ;;  %v4413_v35 = vld [vmem:[#allocation34_spill] sm:$0xff]  ;;  %v1795_v23 = vrot.slane %v3751_v20, %v4384_v60 }
 0x189   :  { %v1634_v1 = vpop.permute.xlu1 %1633 }
 0x18a   :  { %v1718_v37 = vmul.f32 %v1687_v55, %v1634_v1  ;;  %v1719_v31 = vmul.f32 %v1691_v18, %v1634_v1  ;;  %v3955_v9 = vadd.f32 %v3865_v2, %v1730_v14  ;;  %v3958_v39 = vadd.f32 %v3867_v54, %v1731_v21 }
 0x18b   :  { %v1831_v2 = vrot.slane %v3731_v32, %v4384_v60  ;;  %v1835_v54 = vrot.slane %v3733_v62, %v4384_v60  ;;  %v4414_v32 = vld [vmem:[#allocation46_spill] sm:$0xff]  ;;  %v4415_v62 = vld [vmem:[#allocation37_spill] sm:$0xff] }
 0x18c   :  { %2531 = vset.pattern.permute.xlu1 %v4411_v48  ;;  %v1734_v10 = vadd.f32 %v1718_v37, %v3828_v47  ;;  %v1735_v16 = vadd.f32 %v1719_v31, %v3830_v43  ;;  %v3978_v0 = vpop.permute.xlu0 %1945  ;;  %v1783_v45 = vrot.slane %v4415_v62, %v4384_v60 }
 0x18d   :  { %2217 = vperm.xlu1 %2531, %v3568_v3   ;;  %v1642_v33 = vpop.permute.xlu1 %1641  ;;  %v1850_v3 = vmul.f32 %v1831_v2, %v3894_v52  ;;  %v1851_v5 = vmul.f32 %v1835_v54, %v3894_v52 }
 0x18e   :  { %v1722_v48 = vmul.f32 %v1703_v49, %v1642_v33  ;;  %v1723_v34 = vmul.f32 %v1707_v17, %v1642_v33  ;;  %v1862_v47 = vadd.f32 %v3886_v42, %v1734_v10  ;;  %v1863_v43 = vadd.f32 %v3888_v15, %v1735_v16  ;;  %v4416_v42 = vld [vmem:[#allocation38_spill] sm:$0xff] }
 0x18f   :  { %v1787_v15 = vrot.slane %v4416_v42, %v4384_v60 }
 0x190   :  { %v1738_v44 = vadd.f32 %v1722_v48, %v3842_v8  ;;  %v1739_v61 = vadd.f32 %v1723_v34, %v4413_v35  ;;  %v3993_v25 = vpop.permute.xlu0 %1953 }
 0x191   :  { %2533 = vset.pattern.permute.xlu1 %v4412_v19  ;;  %v1791_v19 = vrot.slane %v3749_v28, %v4384_v60 }
 0x192   :  { %2297 = vperm.xlu1 %2533, %v4414_v32   ;;  %v1746_v4 = vpop.permute.xlu1 %1745  ;;  %v1866_v36 = vadd.f32 %v1850_v3, %v1738_v44  ;;  %v1867_v58 = vadd.f32 %v1851_v5, %v1739_v61 }
 0x193   :  { %v1838_v52 = vmul.f32 %v1783_v45, %v1746_v4  ;;  %v1839_v24 = vmul.f32 %v1787_v15, %v1746_v4 }
 0x194   :  { %v4000_v31 = vpop.permute.xlu0 %1961 }
 0x195   :  { %v1854_v8 = vadd.f32 %v1838_v52, %v3875_v27  ;;  %v1855_v22 = vadd.f32 %v1839_v24, %v3878_v50  ;;  %v1807_v27 = vrot.slane %v3718_v29, %v4384_v60  ;;  %v1811_v50 = vrot.slane %v3720_v57, %v4384_v60 }
 0x196   :  { %2301 = vperm.xlu1 %2533, %v3539_v30   ;;  %v1750_v14 = vpop.permute.xlu1 %1749  ;;  %v1827_v29 = vrot.slane %v3747_v53, %v4384_v60 }
 0x197   :  { %v1840_v21 = vmul.f32 %v1791_v19, %v1750_v14  ;;  %v1841_v55 = vmul.f32 %v1795_v23, %v1750_v14  ;;  %v1902_v53 = vadd.f32 %v3910_v13, %v1854_v8  ;;  %v1903_v34 = vadd.f32 %v3910_v13, %v1855_v22 }
 0x199   :  { %v1856_v30 = vadd.f32 %v1840_v21, %v1728_v38  ;;  %v1857_v18 = vadd.f32 %v1841_v55, %v1729_v11  ;;  %v1986_v17 = vpop.permute.xlu0 %1985  ;;  %v4024_v5 = vmax.f32 %v1902_v53, 0.0 }
 0x19a   :  { %2309 = vperm.xlu1 %2533, %v3639_v56   ;;  %v1758_v1 = vpop.permute.xlu1 %1757  ;;  %v1823_v56 = vrot.slane %v3745_v63, %v4384_v60 }
 0x19b   :  { %v1844_v28 = vmul.f32 %v1807_v27, %v1758_v1  ;;  %v1845_v37 = vmul.f32 %v1811_v50, %v1758_v1  ;;  %v2030_v32 = vrot.slane %v4024_v5, 1 }
 0x19d   :  { %v1860_v20 = vadd.f32 %v1844_v28, %v3902_v51  ;;  %v1861_v10 = vadd.f32 %v1845_v37, %v3905_v6  ;;  %v1998_v63 = vpop.permute.xlu0 %1997  ;;  %v2062_v15 = vmul.f32 %v2030_v32, %v1986_v17 }
 0x19e   :  { %v1766_v16 = vpop.permute.xlu1 %1765 }
 0x19f   :  { %v1848_v49 = vmul.f32 %v1823_v56, %v1766_v16  ;;  %v1849_v57 = vmul.f32 %v1827_v29, %v1766_v16  ;;  %v1908_v45 = vadd.f32 %v3923_v7, %v1860_v20  ;;  %v1909_v42 = vadd.f32 %v3923_v7, %v1861_v10 }
 0x1a1   :  { %v1864_v38 = vadd.f32 %v1848_v49, %v3917_v12  ;;  %v1865_v11 = vadd.f32 %v1849_v57, %v3920_v41  ;;  %v4044_v24 = vmax.f32 %v1908_v45, 0.0  ;;  %v4046_v8 = vmax.f32 %v1909_v42, 0.0 }
 0x1a3   :  { %v1870_v2 = vpop.permute.xlu1 %1869  ;;  %v1913_v4 = vadd.f32 %v3943_v26, %v1865_v11  ;;  %v2036_v27 = vrot.slane %v4044_v24, 1  ;;  %v2037_v50 = vrot.slane %v4046_v8, 1  ;;  %v2132_v37 = vrot.slane %v4044_v24, 2 }
 0x1a4   :  { %v4011_v54 = vadd.f32 %v1870_v2, %v3933_v59  ;;  %v4014_v51 = vadd.f32 %v1870_v2, %v3936_v40  ;;  %v2006_v59 = vpop.permute.xlu0 %2005  ;;  %v4026_v40 = vmax.f32 %v1903_v34, 0.0  ;;  %v2133_v20 = vrot.slane %v4046_v8, 2 }
 0x1a5   :  { %v2068_v29 = vmul.f32 %v2036_v27, %v1998_v63  ;;  %v2069_v16 = vmul.f32 %v2037_v50, %v1998_v63 }
 0x1a6   :  { %v2031_v13 = vrot.slane %v4026_v40, 1 }
 0x1a7   :  { %v1878_v6 = vpop.permute.xlu1 %1877 }
 0x1a8   :  { %v1904_v33 = vadd.f32 %v1878_v6, %v1856_v30  ;;  %v1905_v48 = vadd.f32 %v1878_v6, %v1857_v18 }
 0x1aa   :  { %v4052_v19 = vmax.f32 %v1904_v33, 0.0  ;;  %v4054_v7 = vmax.f32 %v1905_v48, 0.0 }
 0x1ab   :  { %v1882_v60 = vpop.permute.xlu1 %1881 }
 0x1ac   :  { %v4019_v12 = vadd.f32 %v1882_v60, %v3955_v9  ;;  %v4022_v41 = vadd.f32 %v1882_v60, %v3958_v39  ;;  %v4034_v9 = vpop.permute.xlu0 %2093  ;;  %v2033_v45 = vrot.slane %v4054_v7, 1 }
 0x1af   :  { %v1890_v3 = vpop.permute.xlu1 %1889 }
 0x1b0   :  { %v4028_v44 = vadd.f32 %v1890_v3, %v1862_v47  ;;  %v4030_v35 = vadd.f32 %v1890_v3, %v1863_v43  ;;  %v2063_v47 = vmul.f32 %v2031_v13, %v1986_v17  ;;  %v1912_v43 = vadd.f32 %v3943_v26, %v1864_v38  ;;  %v4050_v22 = vpop.permute.xlu0 %2105 }
 0x1b1   :  { %v4058_v26 = vmax.f32 %v1913_v4, 0.0  ;;  %v2032_v13 = vrot.slane %v4052_v19, 1 }
 0x1b2   :  { %v4056_v21 = vmax.f32 %v1912_v43, 0.0 }
 0x1b3   :  { %v1898_v61 = vpop.permute.xlu1 %1897  ;;  %v2041_v28 = vrot.slane %v4058_v26, 1 }
 0x1b4   :  { %v4036_v62 = vadd.f32 %v1898_v61, %v1866_v36  ;;  %v4038_v39 = vadd.f32 %v1898_v61, %v1867_v58  ;;  %v2040_v1 = vrot.slane %v4056_v21, 1  ;;  %v2110_v10 = vpop.permute.xlu0 %2109 }
 0x1b5   :  { %v2164_v38 = vmul.f32 %v2132_v37, %v2110_v10  ;;  %v2165_v11 = vmul.f32 %v2133_v20, %v2110_v10  ;;  %v2073_v33 = vmul.f32 %v2041_v28, %v2006_v59 }
 0x1b6   :  { %v2072_v6 = vmul.f32 %v2040_v1, %v2006_v59 }
 0x1b8   :  { %v1938_v52 = vpop.permute.xlu1 %1937  ;;  %v4086_v28 = vpop.permute.xlu0 %2113 }
 0x1b9   :  { %v1966_v36 = vmul.f32 %v1938_v52, %v4024_v5  ;;  %v1967_v58 = vmul.f32 %v1938_v52, %v4026_v40 }
 0x1bb   :  { %v2078_v23 = vadd.f32 %v2062_v15, %v1966_v36  ;;  %v2079_v14 = vadd.f32 %v2063_v47, %v1967_v58  ;;  %v2126_v58 = vrot.slane %v4024_v5, 2 }
 0x1bc   :  { %v1942_v55 = vpop.permute.xlu1 %1941 }
 0x1bd   :  { %v1968_v30 = vmul.f32 %v1942_v55, %v4052_v19  ;;  %v1969_v18 = vmul.f32 %v1942_v55, %v4054_v7  ;;  %v2127_v55 = vrot.slane %v4026_v40, 2 }
 0x1c0   :  { %v1950_v56 = vpop.permute.xlu1 %1949 }
 0x1c1   :  { %v1972_v49 = vmul.f32 %v1950_v56, %v4044_v24  ;;  %v1973_v57 = vmul.f32 %v1950_v56, %v4046_v8 }
 0x1c3   :  { %v2084_v17 = vadd.f32 %v2068_v29, %v1972_v49  ;;  %v2085_v2 = vadd.f32 %v2069_v16, %v1973_v57  ;;  %v2222_v57 = vrot.slane %v4024_v5, 3 }
 0x1c4   :  { %v1958_v48 = vpop.permute.xlu1 %1957 }
 0x1c5   :  { %v1976_v60 = vmul.f32 %v1958_v48, %v4056_v21  ;;  %v1977_v53 = vmul.f32 %v1958_v48, %v4058_v26  ;;  %v4072_v34 = vadd.f32 %v2164_v38, %v2084_v17  ;;  %v4074_v3 = vadd.f32 %v2165_v11, %v2085_v2  ;;  %v4092_v11 = vpop.permute.xlu0 %2121 }
 0x1c6   :  { %v2223_v38 = vrot.slane %v4026_v40, 3 }
 0x1c7   :  { %v2088_v63 = vadd.f32 %v2072_v6, %v1976_v60  ;;  %v2089_v61 = vadd.f32 %v2073_v33, %v1977_v53 }
 0x1ca   :  { %v1982_v32 = vpop.permute.xlu1 %1981 }
 0x1ce   :  { %v1990_v42 = vpop.permute.xlu1 %1989 }
 0x1cf   :  { %v2064_v15 = vmul.f32 %v2032_v13, %v1990_v42  ;;  %v2065_v47 = vmul.f32 %v2033_v45, %v1990_v42  ;;  %v4100_v45 = vpop.permute.xlu0 %2201 }
 0x1d1   :  { %v2080_v59 = vadd.f32 %v2064_v15, %v1968_v30  ;;  %v2081_v43 = vadd.f32 %v2065_v47, %v1969_v18  ;;  %v2128_v30 = vrot.slane %v4052_v19, 2  ;;  %v2129_v18 = vrot.slane %v4054_v7, 2 }
 0x1d2   :  { %v4078_v4 = vpop.permute.xlu1 %1993  ;;  %v1916_v15 = vmax.f32 %v4011_v54, 0.0 }
 0x1d3   :  { %v2214_v47 = vpop.permute.xlu0 %2213 }
 0x1d6   :  { %v4080_v52 = vpop.permute.xlu1 %2001 }
 0x1da   :  { %v4082_v36 = vpop.permute.xlu1 %2009 }
 0x1df   :  { %v2098_v27 = vpop.permute.xlu1 %2097 }
 0x1e0   :  { %v2158_v50 = vmul.f32 %v2126_v58, %v2098_v27  ;;  %v2159_v1 = vmul.f32 %v2127_v55, %v2098_v27  ;;  %v2233_v58 = vrot.slane %v4058_v26, 3  ;;  %v2028_v27 = vrot.slane %v1916_v15, 1 }
 0x1e2   :  { %v2174_v37 = vadd.f32 %v2158_v50, %v2078_v23  ;;  %v2175_v20 = vadd.f32 %v2159_v1, %v2079_v14  ;;  %v2224_v23 = vrot.slane %v4052_v19, 3  ;;  %v2225_v14 = vrot.slane %v4054_v7, 3 }
 0x1e3   :  { %v2102_v10 = vpop.permute.xlu1 %2101  ;;  %v1917_v19 = vmax.f32 %v4014_v51, 0.0  ;;  %v2136_v7 = vrot.slane %v4056_v21, 2 }
 0x1e4   :  { %v2160_v56 = vmul.f32 %v2128_v30, %v2102_v10  ;;  %v2161_v29 = vmul.f32 %v2129_v18, %v2102_v10  ;;  %v2265_v30 = vmul.f32 %v2233_v58, %v2214_v47  ;;  %v2060_v18 = vmul.f32 %v2028_v27, %v1982_v32 }
 0x1e5   :  { %v2029_v50 = vrot.slane %v1917_v19, 1 }
 0x1e6   :  { %v2176_v16 = vadd.f32 %v2160_v56, %v2080_v59  ;;  %v2177_v49 = vadd.f32 %v2161_v29, %v2081_v43  ;;  %v2137_v59 = vrot.slane %v4058_v26, 2  ;;  %v2232_v43 = vrot.slane %v4056_v21, 3 }
 0x1e7   :  { %v2061_v54 = vmul.f32 %v2029_v50, %v1982_v32  ;;  %v2124_v56 = vrot.slane %v1916_v15, 2  ;;  %v2125_v29 = vrot.slane %v1917_v19, 2  ;;  %v1964_v21 = vmul.f32 %v3952_v46, %v1916_v15 }
 0x1e8   :  { %v2194_v17 = vpop.permute.xlu1 %2193  ;;  %v1965_v26 = vmul.f32 %v3952_v46, %v1917_v19  ;;  %v4130_v46 = vmax.f32 %v4030_v35, 0.0 }
 0x1e9   :  { %v2254_v2 = vmul.f32 %v2222_v57, %v2194_v17  ;;  %v2255_v6 = vmul.f32 %v2223_v38, %v2194_v17 }
 0x1eb   :  { %v4096_v33 = vadd.f32 %v2254_v2, %v2174_v37  ;;  %v4098_v48 = vadd.f32 %v2255_v6, %v2175_v20  ;;  %v2264_v20 = vmul.f32 %v2232_v43, %v2214_v47  ;;  %v4121_v2 = vmax.f32 %v4019_v12, 0.0 }
 0x1ec   :  { %v2198_v60 = vpop.permute.xlu1 %2197  ;;  %v2077_v6 = vadd.f32 %v2061_v54, %v1965_v26  ;;  %v2135_v43 = vrot.slane %v4130_v46, 2  ;;  %v2286_v54 = vpop.permute.xlu0 %2285 }
 0x1ed   :  { %v2256_v53 = vmul.f32 %v2224_v23, %v2198_v60  ;;  %v2257_v13 = vmul.f32 %v2225_v14, %v2198_v60  ;;  %v2221_v23 = vrot.slane %v1917_v19, 3  ;;  %v4127_v14 = vmax.f32 %v4028_v44, 0.0 }
 0x1ee   :  { %v2226_v44 = vrot.slane %v4121_v2, 3  ;;  %v1970_v47 = vmul.f32 %v3978_v0, %v4121_v2  ;;  %v2130_v58 = vrot.slane %v4121_v2, 2 }
 0x1ef   :  { %v4102_v5 = vadd.f32 %v2256_v53, %v2176_v16  ;;  %v4104_v40 = vadd.f32 %v2257_v13, %v2177_v49  ;;  %v2228_v16 = vrot.slane %v4044_v24, 3  ;;  %v2229_v49 = vrot.slane %v4046_v8, 3 }
 0x1f0   :  { %v2190_v42 = vpop.permute.xlu1 %2189  ;;  %v2076_v24 = vadd.f32 %v2060_v18, %v1964_v21  ;;  %v2220_v8 = vrot.slane %v1916_v15, 3  ;;  %v2157_v53 = vmul.f32 %v2125_v29, %v4034_v9  ;;  %v1974_v27 = vmul.f32 %v3993_v25, %v4127_v14 }
 0x1f1   :  { %v2253_v15 = vmul.f32 %v2221_v23, %v2190_v42  ;;  %v2039_v18 = vrot.slane %v4130_v46, 1  ;;  %v2231_v21 = vrot.slane %v4130_v46, 3 }
 0x1f2   :  { %v2252_v13 = vmul.f32 %v2220_v8, %v2190_v42  ;;  %v2134_v42 = vrot.slane %v4127_v14, 2 }
 0x1f5   :  { %v2118_v55 = vpop.permute.xlu1 %2117 }
 0x1f6   :  { %v2168_v1 = vmul.f32 %v2136_v7, %v2118_v55  ;;  %v2169_v37 = vmul.f32 %v2137_v59, %v2118_v55 }
 0x1f8   :  { %v2184_v10 = vadd.f32 %v2168_v1, %v2088_v63  ;;  %v2185_v51 = vadd.f32 %v2169_v37, %v2089_v61  ;;  %v4124_v63 = vmax.f32 %v4022_v41, 0.0  ;;  %v2156_v41 = vmul.f32 %v2124_v56, %v4034_v9 }
 0x1f9   :  { %v2173_v9 = vadd.f32 %v2157_v53, %v2077_v6  ;;  %v1931_v56 = vmax.f32 %v4038_v39, 0.0 }
 0x1fa   :  { %v2206_v57 = vpop.permute.xlu1 %2205  ;;  %v4116_v38 = vadd.f32 %v2264_v20, %v2184_v10  ;;  %v4118_v17 = vadd.f32 %v2265_v30, %v2185_v51  ;;  %v2227_v35 = vrot.slane %v4124_v63, 3  ;;  %v2035_v7 = vrot.slane %v4124_v63, 1 }
 0x1fb   :  { %v2260_v61 = vmul.f32 %v2228_v16, %v2206_v57  ;;  %v2261_v32 = vmul.f32 %v2229_v49, %v2206_v57  ;;  %v2172_v59 = vadd.f32 %v2156_v41, %v2076_v24  ;;  %v2131_v55 = vrot.slane %v4124_v63, 2 }
 0x1fc   :  { %v2269_v1 = vadd.f32 %v2253_v15, %v2173_v9  ;;  %v2067_v20 = vmul.f32 %v2035_v7, %v4078_v4  ;;  %v2038_v30 = vrot.slane %v4127_v14, 1  ;;  %v1930_v51 = vmax.f32 %v4036_v62, 0.0 }
 0x1fd   :  { %v4133_v60 = vadd.f32 %v2260_v61, %v4072_v34  ;;  %v4136_v12 = vadd.f32 %v2261_v32, %v4074_v3  ;;  %v1971_v34 = vmul.f32 %v3978_v0, %v4124_v63  ;;  %v2034_v3 = vrot.slane %v4121_v2, 1 }
 0x1fe   :  { %v4140_v19 = vpop.permute.xlu1 %2209  ;;  %v1975_v0 = vmul.f32 %v3993_v25, %v4130_v46  ;;  %v2268_v50 = vadd.f32 %v2252_v13, %v2172_v59  ;;  %v2166_v16 = vmul.f32 %v2134_v42, %v4086_v28  ;;  %v2167_v49 = vmul.f32 %v2135_v43, %v4086_v28 }
 0x1ff   :  { %v2066_v37 = vmul.f32 %v2034_v3, %v4078_v4  ;;  %v2230_v4 = vrot.slane %v4127_v14, 3  ;;  %v2317_v57 = vadd.f32 %v2286_v54, %v2269_v1  ;;  %v2083_v62 = vadd.f32 %v2067_v20, %v1971_v34 }
 0x200   :  { %v2316_v26 = vadd.f32 %v2286_v54, %v2268_v50  ;;  %v2070_v39 = vmul.f32 %v2038_v30, %v4080_v52  ;;  %v2042_v14 = vrot.slane %v1930_v51, 1  ;;  %v2043_v46 = vrot.slane %v1931_v56, 1 }
 0x201   :  { %v2082_v24 = vadd.f32 %v2066_v37, %v1970_v47  ;;  %v2162_v41 = vmul.f32 %v2130_v58, %v4050_v22  ;;  %v2163_v53 = vmul.f32 %v2131_v55, %v4050_v22  ;;  %v2138_v13 = vrot.slane %v1930_v51, 2 }
 0x202   :  { %v2139_v15 = vrot.slane %v1931_v56, 2  ;;  %v2074_v7 = vmul.f32 %v2042_v14, %v4082_v36  ;;  %v2075_v59 = vmul.f32 %v2043_v46, %v4082_v36  ;;  %v1978_v58 = vmul.f32 %v4000_v31, %v1930_v51 }
 0x203   :  { %v2290_v10 = vpop.permute.xlu1 %2289  ;;  %v2178_v42 = vadd.f32 %v2162_v41, %v2082_v24  ;;  %v2179_v43 = vadd.f32 %v2163_v53, %v2083_v62  ;;  %v1979_v22 = vmul.f32 %v4000_v31, %v1931_v56  ;;  %v2262_v55 = vmul.f32 %v2230_v4, %v4140_v19 }
 0x204   :  { %v2318_v29 = vadd.f32 %v2290_v10, %v4096_v33  ;;  %v2319_v25 = vadd.f32 %v2290_v10, %v4098_v48  ;;  %v2071_v33 = vmul.f32 %v2039_v18, %v4080_v52  ;;  %v2086_v52 = vadd.f32 %v2070_v39, %v1974_v27 }
 0x205   :  { %v2263_v27 = vmul.f32 %v2231_v21, %v4140_v19  ;;  %v2259_v36 = vmul.f32 %v2227_v35, %v4100_v45  ;;  %v2234_v50 = vrot.slane %v1930_v51, 3  ;;  %v2235_v1 = vrot.slane %v1931_v56, 3  ;;  %v2306_v21 = vpop.permute.xlu0 %2305 }
 0x206   :  { %v2348_v61 = vrot.slane %v2318_v29, 7  ;;  %v2369_v32 = vrot.slane %v2319_v25, 7  ;;  %v2087_v3 = vadd.f32 %v2071_v33, %v1975_v0  ;;  %v2258_v0 = vmul.f32 %v2226_v44, %v4100_v45 }
 0x207   :  { %v2294_v6 = vpop.permute.xlu1 %2293  ;;  %v2090_v37 = vadd.f32 %v2074_v7, %v1978_v58  ;;  %v2091_v20 = vadd.f32 %v2075_v59, %v1979_v22  ;;  %v2182_v30 = vadd.f32 %v2166_v16, %v2086_v52  ;;  %v2170_v31 = vmul.f32 %v2138_v13, %v4092_v11 }
 0x208   :  { %v2350_v48 = vsel %vm2349_vm0, %v2348_v61, %v2316_v26  ;;  %v2370_v8 = vsel %vm2349_vm0, %v2369_v32, %v2317_v57  ;;  %v2320_v28 = vadd.f32 %v2294_v6, %v4102_v5  ;;  %v2321_v23 = vadd.f32 %v2294_v6, %v4104_v40 }
 0x209   :  { %v2183_v18 = vadd.f32 %v2167_v49, %v2087_v3  ;;  %v2171_v54 = vmul.f32 %v2139_v15, %v4092_v11  ;;  %v2274_v10 = vadd.f32 %v2258_v0, %v2178_v42  ;;  %v2275_v19 = vadd.f32 %v2259_v36, %v2179_v43  ;;  %v2314_v32 = vpop.permute.xlu0 %2313 }
 0x20a   :  { %v2351_v47 = vrot.slane %v2320_v28, 6  ;;  %v2371_v34 = vrot.slane %v2321_v23, 6  ;;  %v2278_v29 = vadd.f32 %v2262_v55, %v2182_v30  ;;  %v2186_v35 = vadd.f32 %v2170_v31, %v2090_v37 }
 0x20b   :  { %v2279_v25 = vadd.f32 %v2263_v27, %v2183_v18  ;;  %v2187_v51 = vadd.f32 %v2171_v54, %v2091_v20 }
 0x20c   :  { %v2353_v5 = vsel %vm2352_vm1, %v2351_v47, %v2350_v48  ;;  %v2372_v40 = vsel %vm2352_vm1, %v2371_v34, %v2370_v8  ;;  %v2218_v9 = vpop.permute.xlu1 %2217  ;;  %v2326_v49 = vadd.f32 %v2306_v21, %v2278_v29 }
 0x20d   :  { %v2266_v2 = vmul.f32 %v2234_v50, %v2218_v9  ;;  %v2267_v44 = vmul.f32 %v2235_v1, %v2218_v9  ;;  %v2327_v26 = vadd.f32 %v2306_v21, %v2279_v25 }
 0x20e   :  { %v2360_v8 = vrot.slane %v2326_v49, 3 }
 0x20f   :  { %v2282_v57 = vadd.f32 %v2266_v2, %v2186_v35  ;;  %v2283_v61 = vadd.f32 %v2267_v44, %v2187_v51  ;;  %v2377_v28 = vrot.slane %v2327_v26, 3 }
 0x211   :  { %v2298_v4 = vpop.permute.xlu1 %2297  ;;  %v2330_v23 = vadd.f32 %v2314_v32, %v2282_v57  ;;  %v2331_v14 = vadd.f32 %v2314_v32, %v2283_v61 }
 0x212   :  { %v2322_v63 = vadd.f32 %v2298_v4, %v2274_v10  ;;  %v2323_v45 = vadd.f32 %v2298_v4, %v2275_v19 }
 0x213   :  { %v2366_v52 = vrot.slane %v2330_v23, 1  ;;  %v2381_v3 = vrot.slane %v2331_v14, 1 }
 0x214   :  { %v2354_v56 = vrot.slane %v2322_v63, 5  ;;  %v2373_v16 = vrot.slane %v2323_v45, 5 }
 0x215   :  { %v2302_v11 = vpop.permute.xlu1 %2301 }
 0x216   :  { %v2356_v24 = vsel %vm2355_vm2, %v2354_v56, %v2353_v5  ;;  %v2374_v62 = vsel %vm2355_vm2, %v2373_v16, %v2372_v40  ;;  %v2324_v39 = vadd.f32 %v2302_v11, %v4133_v60  ;;  %v2325_v33 = vadd.f32 %v2302_v11, %v4136_v12 }
 0x218   :  { %v2357_v6 = vrot.slane %v2324_v39, 4  ;;  %v2375_v48 = vrot.slane %v2325_v33, 4 }
 0x219   :  { %v2310_v46 = vpop.permute.xlu1 %2309 }
 0x21a   :  { %v2359_v41 = vsel %vm2358_vm3, %v2357_v6, %v2356_v24  ;;  %v2376_v53 = vsel %vm2358_vm3, %v2375_v48, %v2374_v62  ;;  %v2328_v13 = vadd.f32 %v2310_v46, %v4116_v38  ;;  %v2329_v15 = vadd.f32 %v2310_v46, %v4118_v17 }
 0x21b   :  { %v2362_v47 = vsel %vm2361_vm4, %v2360_v8, %v2359_v41  ;;  %v2378_v60 = vsel %vm2361_vm4, %v2377_v28, %v2376_v53 }
 0x21c   :  { %v2363_v12 = vrot.slane %v2328_v13, 2  ;;  %v2379_v34 = vrot.slane %v2329_v15, 2 }
 0x21e   :  { %v2365_v7 = vsel %vm2364_vm5, %v2363_v12, %v2362_v47  ;;  %v2380_v59 = vsel %vm2364_vm5, %v2379_v34, %v2378_v60 }
 0x21f   :  { %v2368_v5 = vsel %vm2367_vm6, %v2366_v52, %v2365_v7  ;;  %v2382_v40 = vsel %vm2367_vm6, %v2381_v3, %v2380_v59 }
 0x220   :  { %2385 = vst [vmem:[#allocation9] sm:$0xff] %v2368_v5  ;;  %2386 = vst [vmem:[#allocation9 + $0x8] sm:$0xff] %v2382_v40 }
 0x221   :  { %2607 = shalt.err (!%p2604_p9)
}
 0x222   :  { %s2608_s0 = scalar_lea.hbm %s4214_s4, 256 }
 0x223   :  { %p2609_p10 = scmp.ne.s32.totalorder %s4214_s4, %s2608_s0  ;;  %p2612_p11 = scmp.lt.u32.totalorder %s2608_s0, %s4214_s4 }
 0x225   :  { %p2614_p12 = pnand %p2612_p11, %p2609_p10 }
 0x227   :  { %2617 = shalt.err (!%p2614_p12)
}
 0x228   :  { %2396 = dma.vmem_to_hbm [thread:$0]  %s2394_s30, 256, %s4214_s4, [#allocation6]  }
 0x229   :  { %2624 = dma.done.wait [#allocation6], 256  }
 0x22a   :  { %2625 = vsyncadd [#allocation6], 4294967040 }
 0x22b   :  { %2400 = vsyncpa [#allocation5], 1 }
 0x22c   :  { %2401 = vsyncpa [#allocation8], 1 }
 0x22d   :  { %2402 = vsyncpa [#allocation6], 1 }

</bundles_post_ra>
